<compile_context>
chip_gen: v7x
topology: tpu7x:2x2x1
jax: 0.10.0
libtpu: 0.0.40
codegen_flags: <defaults>
</compile_context>

<pallas_src>
import functools

import numpy as np
import jax
import jax.numpy as jnp
from jax.experimental import pallas as pl
from jax.experimental.pallas import tpu as pltpu


def _round_up(x, m):
    return (x + m - 1) // m * m


def _tile_m(m):
    """Pick (tm, mp): tm | mp, tm % 16 == 0 (bf16 sublanes), >=2 tiles when M >= 64."""
    if m >= 4096:
        tm = 1024
    elif m >= 1024:
        tm = 512
    elif m >= 64:
        tm = _round_up(m, 32) // 2      # two tiles -> both v7x TensorCores get work
    else:
        tm = _round_up(m, 16)           # tiny layer: single tile
    return tm, _round_up(m, tm)


# --------------------------------------------------------------------------
# Pallas fused matmul + bias + activation (drives every conv / deconv)
# --------------------------------------------------------------------------
def _matmul_kernel(a_ref, b_ref, bias_ref, o_ref, *, act):
    # Full K is resident: one bf16 x bf16 -> f32 dot, fused bias + activation,
    # single bf16 cast on the way out.  No accumulator state across grid steps.
    y = jnp.dot(a_ref[...], b_ref[...], preferred_element_type=jnp.float32)
    y = y + bias_ref[...]
    if act == "relu":
        y = jnp.maximum(y, 0.0)
    elif act == "sigmoid":
        y = jax.nn.sigmoid(y)
    elif act == "tanh":
        y = jnp.tanh(y)
    o_ref[...] = y.astype(o_ref.dtype)


def matmul_bias_act(a, w_p, bias_p, n, act="none"):
    """act(a[p] @ w_p[p] + bias) for every phase p, emitted in bf16.

    a      : (P, M, K)  bf16 activations (P=1 for convs, P=4 for deconv phases)
    w_p    : (P, Kp, Np) bf16, pre-padded weights (built once at init)
    bias_p : (1, Np)     f32, pre-padded bias
    n      : true output channel count (<= Np)
    returns (P, M, n) bf16
    """
    a = a.astype(jnp.bfloat16)
    P, m, k = a.shape
    _, kp, np_ = w_p.shape

    tm, mp = _tile_m(m)
    if mp != m or kp != k:              # only e1 needs K padding; M pad only for tiny layers
        a = jnp.pad(a, ((0, 0), (0, mp - m), (0, kp - k)))

    out = pl.pallas_call(
        functools.partial(_matmul_kernel, act=act),
        out_shape=jax.ShapeDtypeStruct((P, mp, np_), jnp.bfloat16),
        grid_spec=pltpu.PrefetchScalarGridSpec(
            num_scalar_prefetch=0,
            grid=(P, mp // tm),
            in_specs=[
                # A tile streams over M; leading phase dim is squeezed away.
                pl.BlockSpec((None, tm, kp), lambda p, i: (p, i, 0)),
                # Whole weight / bias stay VMEM-resident across the M loop.
                pl.BlockSpec((None, kp, np_), lambda p, i: (p, 0, 0)),
                pl.BlockSpec((1, np_), lambda p, i: (0, 0)),
            ],
            out_specs=pl.BlockSpec((None, tm, np_), lambda p, i: (p, i, 0)),
        ),
        compiler_params=pltpu.CompilerParams(
            dimension_semantics=("parallel", "parallel"),
            vmem_limit_bytes=48 * 1024 * 1024),
    )(a, w_p, bias_p)

    if mp != m or np_ != n:
        out = out[:, :m, :n]
    return out


# --------------------------------------------------------------------------
# Conv2d (NHWC, bf16) via im2col + Pallas matmul
# --------------------------------------------------------------------------
def conv2d(x, p, cout, kh, kw, stride, pad, act):
    """x: (B, H, W, Cin) bf16 NHWC -> (B, OH, OW, cout) bf16."""
    B, H, W, C = x.shape
    xp = jnp.pad(x, ((0, 0), (pad, pad), (pad, pad), (0, 0)))
    OH = (H + 2 * pad - kh) // stride + 1
    OW = (W + 2 * pad - kw) // stride + 1
    cols = []
    for i in range(kh):
        for j in range(kw):
            cols.append(xp[:, i:i + stride * (OH - 1) + 1:stride,
                              j:j + stride * (OW - 1) + 1:stride, :])
    a = jnp.concatenate(cols, axis=-1).reshape(1, B * OH * OW, kh * kw * C)
    y = matmul_bias_act(a, p["w"], p["b"], cout, act)
    return y[0].reshape(B, OH, OW, cout)


# --------------------------------------------------------------------------
# ConvTranspose2d(kernel=4, stride=2, padding=1) via sub-pixel decomposition;
# all four phases run in ONE pallas_call (leading phase grid axis).
# --------------------------------------------------------------------------
def conv_transpose2d(x, p, cout, act):
    """x: (B, H, W, Cin) bf16 -> (B, 2H, 2W, cout) bf16."""
    B, H, W, C = x.shape
    xp = jnp.pad(x, ((0, 0), (1, 1), (1, 1), (0, 0)))
    phases = []
    for r in range(2):
        for c in range(2):
            cols = []
            for di in range(2):
                for dj in range(2):
                    cols.append(xp[:, r + di:r + di + H, c + dj:c + dj + W, :])
            phases.append(jnp.concatenate(cols, axis=-1).reshape(B * H * W, 4 * C))
    a = jnp.stack(phases, axis=0)                          # (4, B*H*W, 4C) bf16
    y = matmul_bias_act(a, p["w"], p["b"], cout, act)      # (4, B*H*W, cout) bf16
    # Interleave phases: out[:, 2a+r, 2b+c, :] = phase[2r+c][:, a, b, :]
    y = y.reshape(2, 2, B, H, W, cout)                     # (r, c, B, H, W, Cout)
    y = jnp.transpose(y, (2, 3, 0, 4, 1, 5))               # (B, H, r, W, c, Cout)
    return y.reshape(B, 2 * H, 2 * W, cout)


# --------------------------------------------------------------------------
# Weight packing (done once, outside the per-forward path)
# --------------------------------------------------------------------------
def pack_conv(w, b):
    """w: (Cout, Cin, kh, kw) PyTorch Conv2d layout -> padded bf16 (1, Kp, Np)."""
    cout, cin, kh, kw = w.shape
    k = kh * kw * cin
    wm = jnp.transpose(w, (2, 3, 1, 0)).reshape(k, cout)   # (i, j, cin)-major rows
    kp, np_ = _round_up(k, 128), _round_up(cout, 128)
    w_p = jnp.pad(wm, ((0, kp - k), (0, np_ - cout))).astype(jnp.bfloat16)
    b_p = jnp.pad(b.astype(jnp.float32), (0, np_ - cout)).reshape(1, np_)
    return {"w": w_p[None], "b": b_p}


def pack_deconv(w, b):
    """w: (Cin, Cout, 4, 4) PyTorch ConvTranspose2d layout (stride=2, pad=1).

    Builds the four 2x2 sub-pixel phase kernels, stacked as (4, Kp, Np) bf16.
    Phase (r, c) produces output pixels (2a+r, 2b+c); tap (di, dj) reads input
    pixel (a + r + di - 1, b + c + dj - 1) with weight w[..., sel_r[di], sel_c[dj]],
    sel_0 = (3, 1), sel_1 = (2, 0)  (flipped-kernel form; validated vs lax below).
    """
    cin, cout, kh, kw = w.shape
    assert kh == 4 and kw == 4
    k = 4 * cin
    kp, np_ = _round_up(k, 128), _round_up(cout, 128)
    b_p = jnp.pad(b.astype(jnp.float32), (0, np_ - cout)).reshape(1, np_)
    phases = []
    for r in range(2):
        sel_r = jnp.asarray((3, 1) if r == 0 else (2, 0))
        for c in range(2):
            sel_c = jnp.asarray((3, 1) if c == 0 else (2, 0))
            wsub = w[:, :, sel_r, :][:, :, :, sel_c]        # (Cin, Cout, 2, 2)
            wm = jnp.transpose(wsub, (2, 3, 0, 1)).reshape(k, cout)
            phases.append(jnp.pad(wm, ((0, kp - k), (0, np_ - cout))).astype(jnp.bfloat16))
    return {"w": jnp.stack(phases, axis=0), "b": b_p}


def pack_params(raw):
    return {
        "e1": pack_conv(raw["e1"]["w"], raw["e1"]["b"]),
        "e2": pack_conv(raw["e2"]["w"], raw["e2"]["b"]),
        "e3": pack_conv(raw["e3"]["w"], raw["e3"]["b"]),
        "d1": pack_deconv(raw["d1"]["w"], raw["d1"]["b"]),
        "d2": pack_deconv(raw["d2"]["w"], raw["d2"]["b"]),
        "d3": pack_deconv(raw["d3"]["w"], raw["d3"]["b"]),
    }


# --------------------------------------------------------------------------
# SegNet forward (NHWC bf16 internally, NCHW f32 at the boundary)
# --------------------------------------------------------------------------
def segnet_forward(params, x):
    """x: (B, 6, H, W) NCHW f32 -> mask (B, 1, H, W) f32 in [0, 1]."""
    h = jnp.transpose(x, (0, 2, 3, 1)).astype(jnp.bfloat16)
    h = conv2d(h, params["e1"], 64, 4, 4, 2, 1, "relu")
    h = conv2d(h, params["e2"], 128, 4, 4, 2, 1, "relu")
    h = conv2d(h, params["e3"], 256, 4, 4, 2, 1, "relu")
    h = conv_transpose2d(h, params["d1"], 128, "relu")
    h = conv_transpose2d(h, params["d2"], 64, "relu")
    logits = conv_transpose2d(h, params["d3"], 1, "none")   # bf16, 1 channel
    mask = jax.nn.sigmoid(logits.astype(jnp.float32))       # sigmoid after the slice
    return jnp.transpose(mask, (0, 3, 1, 2))


# --------------------------------------------------------------------------
# Plain-JAX reference (same bf16 layer boundaries) for numerical validation
# --------------------------------------------------------------------------
def _ref_conv(x, w, b, stride, pad):
    y = jax.lax.conv_general_dilated(
        x.astype(jnp.bfloat16), w.astype(jnp.bfloat16),
        window_strides=(stride, stride), padding=[(pad, pad), (pad, pad)],
        dimension_numbers=("NCHW", "OIHW", "NCHW"),
        preferred_element_type=jnp.float32)
    return y + b.reshape(1, -1, 1, 1).astype(jnp.float32)


def _ref_deconv(x, w, b):
    # PyTorch ConvTranspose2d(k=4, s=2, p=1) == conv with flipped kernel,
    # lhs_dilation=2, padding=k-1-p=2.
    wf = jnp.flip(w, axis=(2, 3)).transpose(1, 0, 2, 3)      # (Cout, Cin, 4, 4)
    y = jax.lax.conv_general_dilated(
        x.astype(jnp.bfloat16), wf.astype(jnp.bfloat16),
        window_strides=(1, 1), padding=[(2, 2), (2, 2)], lhs_dilation=(2, 2),
        dimension_numbers=("NCHW", "OIHW", "NCHW"),
        preferred_element_type=jnp.float32)
    return y + b.reshape(1, -1, 1, 1).astype(jnp.float32)


def segnet_reference(raw, x):
    relu = lambda t: jnp.maximum(t, 0.0).astype(jnp.bfloat16)
    h = relu(_ref_conv(x, raw["e1"]["w"], raw["e1"]["b"], 2, 1))
    h = relu(_ref_conv(h, raw["e2"]["w"], raw["e2"]["b"], 2, 1))
    h = relu(_ref_conv(h, raw["e3"]["w"], raw["e3"]["b"], 2, 1))
    h = relu(_ref_deconv(h, raw["d1"]["w"], raw["d1"]["b"]))
    h = relu(_ref_deconv(h, raw["d2"]["w"], raw["d2"]["b"]))
    h = _ref_deconv(h, raw["d3"]["w"], raw["d3"]["b"])
    return jax.nn.sigmoid(h.astype(jnp.float32))


# --------------------------------------------------------------------------
# Deterministic synthetic parameter init (PyTorch default-style uniform)
# --------------------------------------------------------------------------
def _uniform(key, shape, fan_in):
    bound = 1.0 / np.sqrt(fan_in)
    return jax.random.uniform(key, shape, jnp.float32, -bound, bound)


def init_raw_params(key, input_channels=6, output_channels=1):
    keys = iter(jax.random.split(key, 16))

    def conv(cin, cout, k):
        w = _uniform(next(keys), (cout, cin, k, k), cin * k * k)
        b = _uniform(next(keys), (cout,), cin * k * k)
        return {"w": w, "b": b}

    def deconv(cin, cout, k):
        w = _uniform(next(keys), (cin, cout, k, k), cout * k * k)
        b = _uniform(next(keys), (cout,), cout * k * k)
        return {"w": w, "b": b}

    return {
        "e1": conv(input_channels, 64, 4),
        "e2": conv(64, 128, 4),
        "e3": conv(128, 256, 4),
        "d1": deconv(256, 128, 4),
        "d2": deconv(128, 64, 4),
        "d3": deconv(64, output_channels, 4),
    }


if __name__ == "__main__":
    B, C, H, W = 2, 6, 16, 16
    key = jax.random.PRNGKey(0)
    k_param, k_x = jax.random.split(key)
    raw = init_raw_params(k_param)
    params = pack_params(raw)
    x = jax.random.normal(k_x, (B, C, H, W), jnp.float32)

    fwd = jax.jit(segnet_forward)
    mask = fwd(params, x)
    jax.block_until_ready(mask)

    assert mask.shape == (B, 1, H, W)
    assert bool(jnp.all(jnp.isfinite(mask)))
    assert bool(jnp.all((mask >= 0.0) & (mask <= 1.0)))

    # Numerical check against a plain-JAX lax.conv reference (same bf16 layer
    # boundaries) -- validates the deconv sub-pixel decomposition end to end.
    ref = jax.jit(segnet_reference)(raw, x)
    jax.block_until_ready(ref)
    err = float(jnp.max(jnp.abs(mask - ref)))
    assert err < 2e-2, f"max abs error vs reference: {err}"

    print("KERNEL_OK")
</pallas_src>

<mosaic_0001>
module attributes {stable_mosaic.version = 11 : i64} {
  func.func @_matmul_kernel(%arg0: i32, %arg1: i32, %arg2: memref<1x64x128xbf16, #tpu.memory_space<vmem>>, %arg3: memref<1x128x128xbf16, #tpu.memory_space<vmem>>, %arg4: memref<1x128xf32, #tpu.memory_space<vmem>>, %arg5: memref<1x64x128xbf16, #tpu.memory_space<vmem>>) attributes {dimension_semantics = [#tpu.dimension_semantics<parallel>, #tpu.dimension_semantics<parallel>], iteration_bounds = array<i64: 1, 2>, scalar_prefetch = 0 : i64, scratch_operands = 0 : i64, tpu.core_type = #tpu.core_type<tc>, window_params = [{transform_indices = @transform_0, window_bounds = array<i64: 1, 64, 128>}, {transform_indices = @transform_1, window_bounds = array<i64: 1, 128, 128>}, {pipeline_mode = #tpu.pipeline_mode<synchronous>, transform_indices = @transform_2, window_bounds = array<i64: 1, 128>}, {transform_indices = @transform_3, window_bounds = array<i64: 1, 64, 128>}]} {
    %c0 = arith.constant 0 : index
    %c0_0 = arith.constant 0 : index
    %c0_1 = arith.constant 0 : index
    %0 = vector.load %arg2[%c0, %c0_0, %c0_1] : memref<1x64x128xbf16, #tpu.memory_space<vmem>>, vector<1x64x128xbf16>
    %1 = vector.shape_cast %0 : vector<1x64x128xbf16> to vector<64x128xbf16>
    %c0_2 = arith.constant 0 : index
    %c0_3 = arith.constant 0 : index
    %c0_4 = arith.constant 0 : index
    %2 = vector.load %arg3[%c0_2, %c0_3, %c0_4] : memref<1x128x128xbf16, #tpu.memory_space<vmem>>, vector<1x128x128xbf16>
    %3 = vector.shape_cast %2 : vector<1x128x128xbf16> to vector<128x128xbf16>
    %cst = arith.constant dense<0.000000e+00> : vector<64x128xf32>
    %4 = tpu.matmul %1, %3, %cst {dimension_numbers = #tpu.dot_dimension_numbers<[1], [0], [0], [1], [0, 0, 1, 1], [], []>} : vector<64x128xbf16>, vector<128x128xbf16>, vector<64x128xf32> -> vector<64x128xf32>
    %c0_5 = arith.constant 0 : index
    %c0_6 = arith.constant 0 : index
    %5 = vector.load %arg4[%c0_5, %c0_6] : memref<1x128xf32, #tpu.memory_space<vmem>>, vector<1x128xf32>
    %6 = vector.broadcast %5 : vector<1x128xf32> to vector<64x128xf32>
    %7 = arith.addf %4, %6 : vector<64x128xf32>
    %cst_7 = arith.constant 0.000000e+00 : f32
    %8 = vector.broadcast %cst_7 : f32 to vector<64x128xf32>
    %9 = arith.maximumf %7, %8 : vector<64x128xf32>
    %10 = arith.truncf %9 : vector<64x128xf32> to vector<64x128xbf16>
    %c0_8 = arith.constant 0 : index
    %c0_9 = arith.constant 0 : index
    %c0_10 = arith.constant 0 : index
    %11 = vector.load %arg5[%c0_8, %c0_9, %c0_10] : memref<1x64x128xbf16, #tpu.memory_space<vmem>>, vector<1x64x128xbf16>
    %12 = vector.shape_cast %11 : vector<1x64x128xbf16> to vector<64x128xbf16>
    %13 = vector.shape_cast %10 : vector<64x128xbf16> to vector<1x64x128xbf16>
    tpu.vector_store %arg5[%c0_8, %c0_9, %c0_10], %13 {strides = array<i32>} : memref<1x64x128xbf16, #tpu.memory_space<vmem>>, vector<1x64x128xbf16>,
    return
  }
  func.func @transform_0(%arg0: i32, %arg1: i32) -> (i32, i32, i32) {
    %c0_i32 = arith.constant 0 : i32
    %c0_i32_0 = arith.constant 0 : i32
    return %arg0, %arg1, %c0_i32 : i32, i32, i32
  }
  func.func @transform_1(%arg0: i32, %arg1: i32) -> (i32, i32, i32) {
    %c0_i32 = arith.constant 0 : i32
    %c0_i32_0 = arith.constant 0 : i32
    %c0_i32_1 = arith.constant 0 : i32
    return %arg0, %c0_i32, %c0_i32_0 : i32, i32, i32
  }
  func.func @transform_2(%arg0: i32, %arg1: i32) -> (i32, i32) {
    %c0_i32 = arith.constant 0 : i32
    %c0_i32_0 = arith.constant 0 : i32
    %c0_i32_1 = arith.constant 0 : i32
    return %c0_i32, %c0_i32_0 : i32, i32
  }
  func.func @transform_3(%arg0: i32, %arg1: i32) -> (i32, i32, i32) {
    %c0_i32 = arith.constant 0 : i32
    %c0_i32_0 = arith.constant 0 : i32
    return %arg0, %arg1, %c0_i32 : i32, i32, i32
  }
}

module attributes {stable_mosaic.version = 11 : i64} {
  func.func @_matmul_kernel(%arg0: i32, %arg1: i32, %arg2: memref<1x32x1024xbf16, #tpu.memory_space<vmem>>, %arg3: memref<1x1024x128xbf16, #tpu.memory_space<vmem>>, %arg4: memref<1x128xf32, #tpu.memory_space<vmem>>, %arg5: memref<1x32x128xbf16, #tpu.memory_space<vmem>>) attributes {dimension_semantics = [#tpu.dimension_semantics<parallel>, #tpu.dimension_semantics<parallel>], iteration_bounds = array<i64: 1, 1>, scalar_prefetch = 0 : i64, scratch_operands = 0 : i64, tpu.core_type = #tpu.core_type<tc>, window_params = [{transform_indices = @transform_0, window_bounds = array<i64: 1, 32, 1024>}, {transform_indices = @transform_1, window_bounds = array<i64: 1, 1024, 128>}, {pipeline_mode = #tpu.pipeline_mode<synchronous>, transform_indices = @transform_2, window_bounds = array<i64: 1, 128>}, {transform_indices = @transform_3, window_bounds = array<i64: 1, 32, 128>}]} {
    %c0 = arith.constant 0 : index
    %c0_0 = arith.constant 0 : index
    %c0_1 = arith.constant 0 : index
    %0 = vector.load %arg2[%c0, %c0_0, %c0_1] : memref<1x32x1024xbf16, #tpu.memory_space<vmem>>, vector<1x32x1024xbf16>
    %1 = vector.shape_cast %0 : vector<1x32x1024xbf16> to vector<32x1024xbf16>
    %c0_2 = arith.constant 0 : index
    %c0_3 = arith.constant 0 : index
    %c0_4 = arith.constant 0 : index
    %2 = vector.load %arg3[%c0_2, %c0_3, %c0_4] : memref<1x1024x128xbf16, #tpu.memory_space<vmem>>, vector<1x1024x128xbf16>
    %3 = vector.shape_cast %2 : vector<1x1024x128xbf16> to vector<1024x128xbf16>
    %cst = arith.constant dense<0.000000e+00> : vector<32x128xf32>
    %4 = tpu.matmul %1, %3, %cst {dimension_numbers = #tpu.dot_dimension_numbers<[1], [0], [0], [1], [0, 0, 1, 1], [], []>} : vector<32x1024xbf16>, vector<1024x128xbf16>, vector<32x128xf32> -> vector<32x128xf32>
    %c0_5 = arith.constant 0 : index
    %c0_6 = arith.constant 0 : index
    %5 = vector.load %arg4[%c0_5, %c0_6] : memref<1x128xf32, #tpu.memory_space<vmem>>, vector<1x128xf32>
    %6 = vector.broadcast %5 : vector<1x128xf32> to vector<32x128xf32>
    %7 = arith.addf %4, %6 : vector<32x128xf32>
    %cst_7 = arith.constant 0.000000e+00 : f32
    %8 = vector.broadcast %cst_7 : f32 to vector<32x128xf32>
    %9 = arith.maximumf %7, %8 : vector<32x128xf32>
    %10 = arith.truncf %9 : vector<32x128xf32> to vector<32x128xbf16>
    %c0_8 = arith.constant 0 : index
    %c0_9 = arith.constant 0 : index
    %c0_10 = arith.constant 0 : index
    %11 = vector.load %arg5[%c0_8, %c0_9, %c0_10] : memref<1x32x128xbf16, #tpu.memory_space<vmem>>, vector<1x32x128xbf16>
    %12 = vector.shape_cast %11 : vector<1x32x128xbf16> to vector<32x128xbf16>
    %13 = vector.shape_cast %10 : vector<32x128xbf16> to vector<1x32x128xbf16>
    tpu.vector_store %arg5[%c0_8, %c0_9, %c0_10], %13 {strides = array<i32>} : memref<1x32x128xbf16, #tpu.memory_space<vmem>>, vector<1x32x128xbf16>,
    return
  }
  func.func @transform_0(%arg0: i32, %arg1: i32) -> (i32, i32, i32) {
    %c0_i32 = arith.constant 0 : i32
    %c0_i32_0 = arith.constant 0 : i32
    return %arg0, %arg1, %c0_i32 : i32, i32, i32
  }
  func.func @transform_1(%arg0: i32, %arg1: i32) -> (i32, i32, i32) {
    %c0_i32 = arith.constant 0 : i32
    %c0_i32_0 = arith.constant 0 : i32
    %c0_i32_1 = arith.constant 0 : i32
    return %arg0, %c0_i32, %c0_i32_0 : i32, i32, i32
  }
  func.func @transform_2(%arg0: i32, %arg1: i32) -> (i32, i32) {
    %c0_i32 = arith.constant 0 : i32
    %c0_i32_0 = arith.constant 0 : i32
    %c0_i32_1 = arith.constant 0 : i32
    return %c0_i32, %c0_i32_0 : i32, i32
  }
  func.func @transform_3(%arg0: i32, %arg1: i32) -> (i32, i32, i32) {
    %c0_i32 = arith.constant 0 : i32
    %c0_i32_0 = arith.constant 0 : i32
    return %arg0, %arg1, %c0_i32 : i32, i32, i32
  }
}

module attributes {stable_mosaic.version = 11 : i64} {
  func.func @_matmul_kernel(%arg0: i32, %arg1: i32, %arg2: memref<1x16x2048xbf16, #tpu.memory_space<vmem>>, %arg3: memref<1x2048x256xbf16, #tpu.memory_space<vmem>>, %arg4: memref<1x256xf32, #tpu.memory_space<vmem>>, %arg5: memref<1x16x256xbf16, #tpu.memory_space<vmem>>) attributes {dimension_semantics = [#tpu.dimension_semantics<parallel>, #tpu.dimension_semantics<parallel>], iteration_bounds = array<i64: 1, 1>, scalar_prefetch = 0 : i64, scratch_operands = 0 : i64, tpu.core_type = #tpu.core_type<tc>, window_params = [{transform_indices = @transform_0, window_bounds = array<i64: 1, 16, 2048>}, {transform_indices = @transform_1, window_bounds = array<i64: 1, 2048, 256>}, {pipeline_mode = #tpu.pipeline_mode<synchronous>, transform_indices = @transform_2, window_bounds = array<i64: 1, 256>}, {transform_indices = @transform_3, window_bounds = array<i64: 1, 16, 256>}]} {
    %c0 = arith.constant 0 : index
    %c0_0 = arith.constant 0 : index
    %c0_1 = arith.constant 0 : index
    %0 = vector.load %arg2[%c0, %c0_0, %c0_1] : memref<1x16x2048xbf16, #tpu.memory_space<vmem>>, vector<1x16x2048xbf16>
    %1 = vector.shape_cast %0 : vector<1x16x2048xbf16> to vector<16x2048xbf16>
    %c0_2 = arith.constant 0 : index
    %c0_3 = arith.constant 0 : index
    %c0_4 = arith.constant 0 : index
    %2 = vector.load %arg3[%c0_2, %c0_3, %c0_4] : memref<1x2048x256xbf16, #tpu.memory_space<vmem>>, vector<1x2048x256xbf16>
    %3 = vector.shape_cast %2 : vector<1x2048x256xbf16> to vector<2048x256xbf16>
    %cst = arith.constant dense<0.000000e+00> : vector<16x256xf32>
    %4 = tpu.matmul %1, %3, %cst {dimension_numbers = #tpu.dot_dimension_numbers<[1], [0], [0], [1], [0, 0, 1, 1], [], []>} : vector<16x2048xbf16>, vector<2048x256xbf16>, vector<16x256xf32> -> vector<16x256xf32>
    %c0_5 = arith.constant 0 : index
    %c0_6 = arith.constant 0 : index
    %5 = vector.load %arg4[%c0_5, %c0_6] : memref<1x256xf32, #tpu.memory_space<vmem>>, vector<1x256xf32>
    %6 = vector.broadcast %5 : vector<1x256xf32> to vector<16x256xf32>
    %7 = arith.addf %4, %6 : vector<16x256xf32>
    %cst_7 = arith.constant 0.000000e+00 : f32
    %8 = vector.broadcast %cst_7 : f32 to vector<16x256xf32>
    %9 = arith.maximumf %7, %8 : vector<16x256xf32>
    %10 = arith.truncf %9 : vector<16x256xf32> to vector<16x256xbf16>
    %c0_8 = arith.constant 0 : index
    %c0_9 = arith.constant 0 : index
    %c0_10 = arith.constant 0 : index
    %11 = vector.load %arg5[%c0_8, %c0_9, %c0_10] : memref<1x16x256xbf16, #tpu.memory_space<vmem>>, vector<1x16x256xbf16>
    %12 = vector.shape_cast %11 : vector<1x16x256xbf16> to vector<16x256xbf16>
    %13 = vector.shape_cast %10 : vector<16x256xbf16> to vector<1x16x256xbf16>
    tpu.vector_store %arg5[%c0_8, %c0_9, %c0_10], %13 {strides = array<i32>} : memref<1x16x256xbf16, #tpu.memory_space<vmem>>, vector<1x16x256xbf16>,
    return
  }
  func.func @transform_0(%arg0: i32, %arg1: i32) -> (i32, i32, i32) {
    %c0_i32 = arith.constant 0 : i32
    %c0_i32_0 = arith.constant 0 : i32
    return %arg0, %arg1, %c0_i32 : i32, i32, i32
  }
  func.func @transform_1(%arg0: i32, %arg1: i32) -> (i32, i32, i32) {
    %c0_i32 = arith.constant 0 : i32
    %c0_i32_0 = arith.constant 0 : i32
    %c0_i32_1 = arith.constant 0 : i32
    return %arg0, %c0_i32, %c0_i32_0 : i32, i32, i32
  }
  func.func @transform_2(%arg0: i32, %arg1: i32) -> (i32, i32) {
    %c0_i32 = arith.constant 0 : i32
    %c0_i32_0 = arith.constant 0 : i32
    %c0_i32_1 = arith.constant 0 : i32
    return %c0_i32, %c0_i32_0 : i32, i32
  }
  func.func @transform_3(%arg0: i32, %arg1: i32) -> (i32, i32, i32) {
    %c0_i32 = arith.constant 0 : i32
    %c0_i32_0 = arith.constant 0 : i32
    return %arg0, %arg1, %c0_i32 : i32, i32, i32
  }
}

module attributes {stable_mosaic.version = 11 : i64} {
  func.func @_matmul_kernel(%arg0: i32, %arg1: i32, %arg2: memref<1x16x1024xbf16, #tpu.memory_space<vmem>>, %arg3: memref<1x1024x128xbf16, #tpu.memory_space<vmem>>, %arg4: memref<1x128xf32, #tpu.memory_space<vmem>>, %arg5: memref<1x16x128xbf16, #tpu.memory_space<vmem>>) attributes {dimension_semantics = [#tpu.dimension_semantics<parallel>, #tpu.dimension_semantics<parallel>], iteration_bounds = array<i64: 4, 1>, scalar_prefetch = 0 : i64, scratch_operands = 0 : i64, tpu.core_type = #tpu.core_type<tc>, window_params = [{transform_indices = @transform_0, window_bounds = array<i64: 1, 16, 1024>}, {transform_indices = @transform_1, window_bounds = array<i64: 1, 1024, 128>}, {pipeline_mode = #tpu.pipeline_mode<synchronous>, transform_indices = @transform_2, window_bounds = array<i64: 1, 128>}, {transform_indices = @transform_3, window_bounds = array<i64: 1, 16, 128>}]} {
    %c0 = arith.constant 0 : index
    %c0_0 = arith.constant 0 : index
    %c0_1 = arith.constant 0 : index
    %0 = vector.load %arg2[%c0, %c0_0, %c0_1] : memref<1x16x1024xbf16, #tpu.memory_space<vmem>>, vector<1x16x1024xbf16>
    %1 = vector.shape_cast %0 : vector<1x16x1024xbf16> to vector<16x1024xbf16>
    %c0_2 = arith.constant 0 : index
    %c0_3 = arith.constant 0 : index
    %c0_4 = arith.constant 0 : index
    %2 = vector.load %arg3[%c0_2, %c0_3, %c0_4] : memref<1x1024x128xbf16, #tpu.memory_space<vmem>>, vector<1x1024x128xbf16>
    %3 = vector.shape_cast %2 : vector<1x1024x128xbf16> to vector<1024x128xbf16>
    %cst = arith.constant dense<0.000000e+00> : vector<16x128xf32>
    %4 = tpu.matmul %1, %3, %cst {dimension_numbers = #tpu.dot_dimension_numbers<[1], [0], [0], [1], [0, 0, 1, 1], [], []>} : vector<16x1024xbf16>, vector<1024x128xbf16>, vector<16x128xf32> -> vector<16x128xf32>
    %c0_5 = arith.constant 0 : index
    %c0_6 = arith.constant 0 : index
    %5 = vector.load %arg4[%c0_5, %c0_6] : memref<1x128xf32, #tpu.memory_space<vmem>>, vector<1x128xf32>
    %6 = vector.broadcast %5 : vector<1x128xf32> to vector<16x128xf32>
    %7 = arith.addf %4, %6 : vector<16x128xf32>
    %cst_7 = arith.constant 0.000000e+00 : f32
    %8 = vector.broadcast %cst_7 : f32 to vector<16x128xf32>
    %9 = arith.maximumf %7, %8 : vector<16x128xf32>
    %10 = arith.truncf %9 : vector<16x128xf32> to vector<16x128xbf16>
    %c0_8 = arith.constant 0 : index
    %c0_9 = arith.constant 0 : index
    %c0_10 = arith.constant 0 : index
    %11 = vector.load %arg5[%c0_8, %c0_9, %c0_10] : memref<1x16x128xbf16, #tpu.memory_space<vmem>>, vector<1x16x128xbf16>
    %12 = vector.shape_cast %11 : vector<1x16x128xbf16> to vector<16x128xbf16>
    %13 = vector.shape_cast %10 : vector<16x128xbf16> to vector<1x16x128xbf16>
    tpu.vector_store %arg5[%c0_8, %c0_9, %c0_10], %13 {strides = array<i32>} : memref<1x16x128xbf16, #tpu.memory_space<vmem>>, vector<1x16x128xbf16>,
    return
  }
  func.func @transform_0(%arg0: i32, %arg1: i32) -> (i32, i32, i32) {
    %c0_i32 = arith.constant 0 : i32
    %c0_i32_0 = arith.constant 0 : i32
    return %arg0, %arg1, %c0_i32 : i32, i32, i32
  }
  func.func @transform_1(%arg0: i32, %arg1: i32) -> (i32, i32, i32) {
    %c0_i32 = arith.constant 0 : i32
    %c0_i32_0 = arith.constant 0 : i32
    %c0_i32_1 = arith.constant 0 : i32
    return %arg0, %c0_i32, %c0_i32_0 : i32, i32, i32
  }
  func.func @transform_2(%arg0: i32, %arg1: i32) -> (i32, i32) {
    %c0_i32 = arith.constant 0 : i32
    %c0_i32_0 = arith.constant 0 : i32
    %c0_i32_1 = arith.constant 0 : i32
    return %c0_i32, %c0_i32_0 : i32, i32
  }
  func.func @transform_3(%arg0: i32, %arg1: i32) -> (i32, i32, i32) {
    %c0_i32 = arith.constant 0 : i32
    %c0_i32_0 = arith.constant 0 : i32
    return %arg0, %arg1, %c0_i32 : i32, i32, i32
  }
}

module attributes {stable_mosaic.version = 11 : i64} {
  func.func @_matmul_kernel(%arg0: i32, %arg1: i32, %arg2: memref<1x32x512xbf16, #tpu.memory_space<vmem>>, %arg3: memref<1x512x128xbf16, #tpu.memory_space<vmem>>, %arg4: memref<1x128xf32, #tpu.memory_space<vmem>>, %arg5: memref<1x32x128xbf16, #tpu.memory_space<vmem>>) attributes {dimension_semantics = [#tpu.dimension_semantics<parallel>, #tpu.dimension_semantics<parallel>], iteration_bounds = array<i64: 4, 1>, scalar_prefetch = 0 : i64, scratch_operands = 0 : i64, tpu.core_type = #tpu.core_type<tc>, window_params = [{transform_indices = @transform_0, window_bounds = array<i64: 1, 32, 512>}, {transform_indices = @transform_1, window_bounds = array<i64: 1, 512, 128>}, {pipeline_mode = #tpu.pipeline_mode<synchronous>, transform_indices = @transform_2, window_bounds = array<i64: 1, 128>}, {transform_indices = @transform_3, window_bounds = array<i64: 1, 32, 128>}]} {
    %c0 = arith.constant 0 : index
    %c0_0 = arith.constant 0 : index
    %c0_1 = arith.constant 0 : index
    %0 = vector.load %arg2[%c0, %c0_0, %c0_1] : memref<1x32x512xbf16, #tpu.memory_space<vmem>>, vector<1x32x512xbf16>
    %1 = vector.shape_cast %0 : vector<1x32x512xbf16> to vector<32x512xbf16>
    %c0_2 = arith.constant 0 : index
    %c0_3 = arith.constant 0 : index
    %c0_4 = arith.constant 0 : index
    %2 = vector.load %arg3[%c0_2, %c0_3, %c0_4] : memref<1x512x128xbf16, #tpu.memory_space<vmem>>, vector<1x512x128xbf16>
    %3 = vector.shape_cast %2 : vector<1x512x128xbf16> to vector<512x128xbf16>
    %cst = arith.constant dense<0.000000e+00> : vector<32x128xf32>
    %4 = tpu.matmul %1, %3, %cst {dimension_numbers = #tpu.dot_dimension_numbers<[1], [0], [0], [1], [0, 0, 1, 1], [], []>} : vector<32x512xbf16>, vector<512x128xbf16>, vector<32x128xf32> -> vector<32x128xf32>
    %c0_5 = arith.constant 0 : index
    %c0_6 = arith.constant 0 : index
    %5 = vector.load %arg4[%c0_5, %c0_6] : memref<1x128xf32, #tpu.memory_space<vmem>>, vector<1x128xf32>
    %6 = vector.broadcast %5 : vector<1x128xf32> to vector<32x128xf32>
    %7 = arith.addf %4, %6 : vector<32x128xf32>
    %cst_7 = arith.constant 0.000000e+00 : f32
    %8 = vector.broadcast %cst_7 : f32 to vector<32x128xf32>
    %9 = arith.maximumf %7, %8 : vector<32x128xf32>
    %10 = arith.truncf %9 : vector<32x128xf32> to vector<32x128xbf16>
    %c0_8 = arith.constant 0 : index
    %c0_9 = arith.constant 0 : index
    %c0_10 = arith.constant 0 : index
    %11 = vector.load %arg5[%c0_8, %c0_9, %c0_10] : memref<1x32x128xbf16, #tpu.memory_space<vmem>>, vector<1x32x128xbf16>
    %12 = vector.shape_cast %11 : vector<1x32x128xbf16> to vector<32x128xbf16>
    %13 = vector.shape_cast %10 : vector<32x128xbf16> to vector<1x32x128xbf16>
    tpu.vector_store %arg5[%c0_8, %c0_9, %c0_10], %13 {strides = array<i32>} : memref<1x32x128xbf16, #tpu.memory_space<vmem>>, vector<1x32x128xbf16>,
    return
  }
  func.func @transform_0(%arg0: i32, %arg1: i32) -> (i32, i32, i32) {
    %c0_i32 = arith.constant 0 : i32
    %c0_i32_0 = arith.constant 0 : i32
    return %arg0, %arg1, %c0_i32 : i32, i32, i32
  }
  func.func @transform_1(%arg0: i32, %arg1: i32) -> (i32, i32, i32) {
    %c0_i32 = arith.constant 0 : i32
    %c0_i32_0 = arith.constant 0 : i32
    %c0_i32_1 = arith.constant 0 : i32
    return %arg0, %c0_i32, %c0_i32_0 : i32, i32, i32
  }
  func.func @transform_2(%arg0: i32, %arg1: i32) -> (i32, i32) {
    %c0_i32 = arith.constant 0 : i32
    %c0_i32_0 = arith.constant 0 : i32
    %c0_i32_1 = arith.constant 0 : i32
    return %c0_i32, %c0_i32_0 : i32, i32
  }
  func.func @transform_3(%arg0: i32, %arg1: i32) -> (i32, i32, i32) {
    %c0_i32 = arith.constant 0 : i32
    %c0_i32_0 = arith.constant 0 : i32
    return %arg0, %arg1, %c0_i32 : i32, i32, i32
  }
}

module attributes {stable_mosaic.version = 11 : i64} {
  func.func @_matmul_kernel(%arg0: i32, %arg1: i32, %arg2: memref<1x64x256xbf16, #tpu.memory_space<vmem>>, %arg3: memref<1x256x128xbf16, #tpu.memory_space<vmem>>, %arg4: memref<1x128xf32, #tpu.memory_space<vmem>>, %arg5: memref<1x64x128xbf16, #tpu.memory_space<vmem>>) attributes {dimension_semantics = [#tpu.dimension_semantics<parallel>, #tpu.dimension_semantics<parallel>], iteration_bounds = array<i64: 4, 2>, scalar_prefetch = 0 : i64, scratch_operands = 0 : i64, tpu.core_type = #tpu.core_type<tc>, window_params = [{transform_indices = @transform_0, window_bounds = array<i64: 1, 64, 256>}, {transform_indices = @transform_1, window_bounds = array<i64: 1, 256, 128>}, {pipeline_mode = #tpu.pipeline_mode<synchronous>, transform_indices = @transform_2, window_bounds = array<i64: 1, 128>}, {transform_indices = @transform_3, window_bounds = array<i64: 1, 64, 128>}]} {
    %c0 = arith.constant 0 : index
    %c0_0 = arith.constant 0 : index
    %c0_1 = arith.constant 0 : index
    %0 = vector.load %arg2[%c0, %c0_0, %c0_1] : memref<1x64x256xbf16, #tpu.memory_space<vmem>>, vector<1x64x256xbf16>
    %1 = vector.shape_cast %0 : vector<1x64x256xbf16> to vector<64x256xbf16>
    %c0_2 = arith.constant 0 : index
    %c0_3 = arith.constant 0 : index
    %c0_4 = arith.constant 0 : index
    %2 = vector.load %arg3[%c0_2, %c0_3, %c0_4] : memref<1x256x128xbf16, #tpu.memory_space<vmem>>, vector<1x256x128xbf16>
    %3 = vector.shape_cast %2 : vector<1x256x128xbf16> to vector<256x128xbf16>
    %cst = arith.constant dense<0.000000e+00> : vector<64x128xf32>
    %4 = tpu.matmul %1, %3, %cst {dimension_numbers = #tpu.dot_dimension_numbers<[1], [0], [0], [1], [0, 0, 1, 1], [], []>} : vector<64x256xbf16>, vector<256x128xbf16>, vector<64x128xf32> -> vector<64x128xf32>
    %c0_5 = arith.constant 0 : index
    %c0_6 = arith.constant 0 : index
    %5 = vector.load %arg4[%c0_5, %c0_6] : memref<1x128xf32, #tpu.memory_space<vmem>>, vector<1x128xf32>
    %6 = vector.broadcast %5 : vector<1x128xf32> to vector<64x128xf32>
    %7 = arith.addf %4, %6 : vector<64x128xf32>
    %8 = arith.truncf %7 : vector<64x128xf32> to vector<64x128xbf16>
    %c0_7 = arith.constant 0 : index
    %c0_8 = arith.constant 0 : index
    %c0_9 = arith.constant 0 : index
    %9 = vector.load %arg5[%c0_7, %c0_8, %c0_9] : memref<1x64x128xbf16, #tpu.memory_space<vmem>>, vector<1x64x128xbf16>
    %10 = vector.shape_cast %9 : vector<1x64x128xbf16> to vector<64x128xbf16>
    %11 = vector.shape_cast %8 : vector<64x128xbf16> to vector<1x64x128xbf16>
    tpu.vector_store %arg5[%c0_7, %c0_8, %c0_9], %11 {strides = array<i32>} : memref<1x64x128xbf16, #tpu.memory_space<vmem>>, vector<1x64x128xbf16>,
    return
  }
  func.func @transform_0(%arg0: i32, %arg1: i32) -> (i32, i32, i32) {
    %c0_i32 = arith.constant 0 : i32
    %c0_i32_0 = arith.constant 0 : i32
    return %arg0, %arg1, %c0_i32 : i32, i32, i32
  }
  func.func @transform_1(%arg0: i32, %arg1: i32) -> (i32, i32, i32) {
    %c0_i32 = arith.constant 0 : i32
    %c0_i32_0 = arith.constant 0 : i32
    %c0_i32_1 = arith.constant 0 : i32
    return %arg0, %c0_i32, %c0_i32_0 : i32, i32, i32
  }
  func.func @transform_2(%arg0: i32, %arg1: i32) -> (i32, i32) {
    %c0_i32 = arith.constant 0 : i32
    %c0_i32_0 = arith.constant 0 : i32
    %c0_i32_1 = arith.constant 0 : i32
    return %c0_i32, %c0_i32_0 : i32, i32
  }
  func.func @transform_3(%arg0: i32, %arg1: i32) -> (i32, i32, i32) {
    %c0_i32 = arith.constant 0 : i32
    %c0_i32_0 = arith.constant 0 : i32
    return %arg0, %arg1, %c0_i32 : i32, i32, i32
  }
}

</mosaic_0001>

<bundles_post_ra>
// kernel: segnet_forward.6
= control target key start
LH: loop header
LB: loop body
LE: loop exit
PB: predicated region body
PF: predicated region fallthrough
CT: control target
= control target key end

     0   :  { %s745_s12 = smov 0   ;;  %s747_s13 = smov 0   ;;  %s818_s0 = inlined_call_operand.vmem [shape: bf16[1,128,128], index: 0, kind: input, shape index: {}]   ;;  %s819_s1 = inlined_call_operand.vmem [shape: bf16[1,128,128], index: 1, kind: input, shape index: {}]   ;;  %s820_s2 = inlined_call_operand.vmem [shape: f32[1,128], index: 2, kind: input, shape index: {}]   ;;  %s821_s3 = inlined_call_operand.vmem [shape: bf16[1,128,128], index: 3, kind: output, shape index: {}]  }
   0x1   :  { %s749_s14 = smov 0  }
   0x2 LB: > { %s22_s15 = sadd.s32 1, %s719_s13  ;;  %p554_p0 = scmp.ge.s32.totalorder %s723_s14, 1  ;;  %s723_s14 = sphi %s749_s14, %s13_s14   ;;  %s719_s13 = sphi %s747_s13, %s823_s13   ;;  %s715_s12 = sphi %s745_s12, %s822_s12  }
   0x3   : > { %p23_p1 = scmp.ge.s32.totalorder %s22_s15, 2  ;;  %p168_p2 = scmp.lt.s32.totalorder %s723_s14, 3 }
   0x5   : > { %s825_s15 = smov (%p23_p1, %s22_s15), 0  ;;  %p169_p3 = pnand %p554_p0, %p168_p2 }
   0x6   : > { %v689_v0 = vld [vmem:[%s819_s1] sm:$0xff] (!%p169_p3)   ;;  %s555_s18 = sshll.u32 (!%p169_p3), %s715_s12, 3  ;;  %v690_v1 = vld [vmem:[%s819_s1 + $0x8] sm:$0xff] (!%p169_p3)   ;;  %v691_v2 = vld [vmem:[%s819_s1 + $0x10] sm:$0xff] (!%p169_p3)  }
   0x7   : > { %172 = sbr.rel (%p169_p3) target bundleno = 261 (0x105), region = 32  ;;  %p208_p4 = scmp.lt.s32.totalorder (!%p169_p3), %s555_s18, 15  ;;  %625 = vmatprep.subr.bf16.mxu0 (!%p169_p3), %v689_v0  ;;  %649 = vmatprep.subr.bf16.mxu1 (!%p169_p3), %v689_v0  ;;  %v692_v3 = vld [vmem:[%s819_s1 + $0x18] sm:$0xff] (!%p169_p3)   ;;  %v693_v6 = vld [vmem:[%s819_s1 + $0x20] sm:$0xff] (!%p169_p3)   ;;  %v694_v7 = vld [vmem:[%s819_s1 + $0x28] sm:$0xff] (!%p169_p3)  }
   0x8   : > { %626 = vmatpush3.bf16.msra.mxu0 (!%p169_p3), %v689_v0  ;;  %657 = vmatpush3.bf16.msra.mxu1 (!%p169_p3), %v689_v0  ;;  %v695_v8 = vld [vmem:[%s819_s1 + $0x30] sm:$0xff] (!%p169_p3)   ;;  %v696_v9 = vld [vmem:[%s819_s1 + $0x38] sm:$0xff] (!%p169_p3)   ;;  %v559_v12 = vld [vmem:[%s820_s2] ss:$0 sm:$0xff] (!%p169_p3) }
   0x9   : > { %627 = vmatprep.subr.bf16.mxu0 (!%p169_p3), %v690_v1  ;;  %650 = vmatprep.subr.bf16.mxu1 (!%p169_p3), %v690_v1 }
   0xc   : > { %628 = vmatpush3.bf16.msra.mxu0 (!%p169_p3), %v690_v1  ;;  %658 = vmatpush3.bf16.msra.mxu1 (!%p169_p3), %v690_v1 }
   0xd   : > { %629 = vmatprep.subr.bf16.mxu0 (!%p169_p3), %v691_v2  ;;  %651 = vmatprep.subr.bf16.mxu1 (!%p169_p3), %v691_v2 }
   0xe   : > { %s827_s18 = smov (!%p208_p4, %s555_s18), 15 }
   0xf   : > { %s556_s23 = sshll.u32 %s827_s18, 2 }
  0x10   : > { %s780_s26 = scalar_lea.vmem %s818_s0, %s556_s23  ;;  %630 = vmatpush3.bf16.msra.mxu0 %v691_v2  ;;  %659 = vmatpush3.bf16.msra.mxu1 %v691_v2  ;;  %s228_s17 = scalar_lea.vmem %s821_s3, %s556_s23 }
  0x11   : > { %v697_v4 = vld [vmem:[%s780_s26] sm:$0xff]   ;;  %v698_v5 = vld [vmem:[%s780_s26 + $0x10] sm:$0xff]   ;;  %631 = vmatprep.subr.bf16.mxu0 %v692_v3  ;;  %652 = vmatprep.subr.bf16.mxu1 %v692_v3  ;;  %v699_v10 = vld [vmem:[%s780_s26 + $0x8] sm:$0xff]  }
  0x12   : > { %641 = vmatprep.mubr.bf16.mxu0 %v697_v4  ;;  %645 = vmatprep.mubr.bf16.mxu1 %v698_v5  ;;  %v700_v11 = vld [vmem:[%s780_s26 + $0x18] sm:$0xff]  }
  0x14   : > { %632 = vmatpush3.bf16.msra.mxu0 %v692_v3  ;;  %660 = vmatpush3.bf16.msra.mxu1 %v692_v3 }
  0x15   : > { %633 = vmatprep.subr.bf16.mxu0 %v693_v6  ;;  %653 = vmatprep.subr.bf16.mxu1 %v693_v6 }
  0x18   : > { %634 = vmatpush3.bf16.msra.mxu0 %v693_v6  ;;  %661 = vmatpush3.bf16.msra.mxu1 %v693_v6 }
  0x19   : > { %635 = vmatprep.subr.bf16.mxu0 %v694_v7  ;;  %654 = vmatprep.subr.bf16.mxu1 %v694_v7 }
  0x1c   : > { %636 = vmatpush3.bf16.msra.mxu0 %v694_v7  ;;  %662 = vmatpush3.bf16.msra.mxu1 %v694_v7 }
  0x1d   : > { %637 = vmatprep.subr.bf16.mxu0 %v695_v8  ;;  %655 = vmatprep.subr.bf16.mxu1 %v695_v8 }
  0x20   : > { %638 = vmatpush3.bf16.msra.mxu0 %v695_v8  ;;  %663 = vmatpush3.bf16.msra.mxu1 %v695_v8 }
  0x21   : > { %639 = vmatprep.subr.bf16.mxu0 %v696_v9  ;;  %656 = vmatprep.subr.bf16.mxu1 %v696_v9 }
  0x24   : > { %640 = vmatpush3.bf16.msra.mxu0 %v696_v9  ;;  %664 = vmatpush3.bf16.msra.mxu1 %v696_v9 }
  0x27   : > { %642 = vmatmul.mubr.bf16.vlgmr.msra.gmra.mrb[0].mxu0 %v699_v10  ;;  %646 = vmatmul.mubr.bf16.vlgmr.msra.gmra.mrb[0].mxu1 %v700_v11 }
  0xfa   : > { %v643_v13 = vpop.f32.mrb[0].mxu0  ;;  %v647_v14 = vpop.f32.mrb[0].mxu1 }
  0xfb   : > { %v377_v15 = vadd.f32 %v643_v13, %v559_v12  ;;  %v393_v16 = vadd.f32 %v647_v14, %v559_v12  ;;  %v368_v17 = vpop.f32.mrb[1].mxu0  ;;  %v384_v18 = vpop.f32.mrb[1].mxu1 }
  0xfc   : > { %v369_v19 = vadd.f32 %v559_v12, %v368_v17  ;;  %v385_v20 = vadd.f32 %v559_v12, %v384_v18  ;;  %v644_v21 = vpop.f32.mrb[2].mxu0  ;;  %v648_v22 = vpop.f32.mrb[2].mxu1 }
  0xfd   : > { %v380_v23 = vadd.f32 %v644_v21, %v559_v12  ;;  %v396_v24 = vadd.f32 %v648_v22, %v559_v12  ;;  %v371_v25 = vpop.f32.mrb[3].mxu0  ;;  %v387_v26 = vpop.f32.mrb[3].mxu1  ;;  %v401_v29 = vmax.f32 %v377_v15, 0.0  ;;  %v405_v30 = vmax.f32 %v393_v16, 0.0 }
  0xfe   : > { %v372_v27 = vadd.f32 %v559_v12, %v371_v25  ;;  %v388_v28 = vadd.f32 %v559_v12, %v387_v26  ;;  %v399_v33 = vmax.f32 %v369_v19, 0.0  ;;  %v403_v34 = vmax.f32 %v385_v20, 0.0 }
  0xff   : > { %v402_v31 = vmax.f32 %v380_v23, 0.0  ;;  %v406_v32 = vmax.f32 %v396_v24, 0.0 }
 0x100   : > { %v400_v35 = vmax.f32 %v372_v27, 0.0  ;;  %v404_v36 = vmax.f32 %v388_v28, 0.0 }
 0x101   : > { %v598_v37 = vpack.c.bf16 %v402_v31, %v401_v29  ;;  %v608_v38 = vpack.c.bf16 %v406_v32, %v405_v30 }
 0x102   : > { %v593_v39 = vpack.c.bf16 %v400_v35, %v399_v33  ;;  %v603_v40 = vpack.c.bf16 %v404_v36, %v403_v34 }
 0x103   : > { %610 = vst [vmem:[%s228_s17 + $0x8] sm:$0xff] %v598_v37   ;;  %612 = vst [vmem:[%s228_s17 + $0x18] sm:$0xff] %v608_v38  }
 0x104   : > { %594 = vst [vmem:[%s228_s17] sm:$0xff] %v593_v39   ;;  %611 = vst [vmem:[%s228_s17 + $0x10] sm:$0xff] %v603_v40  }
 0x105 PF: > { %s13_s14 = sadd.s32 1, %s723_s14   ;;  %s822_s12 = smov %s719_s13 }
 0x106   : > { %p10_p5 = scmp.ge.s32.totalorder %s13_s14, 4   ;;  %s823_s13 = smov %s825_s15 }
 0x108   :  { %12 = sbr.rel (!%p10_p5) target bundleno = 2 (0x2), region = 65 }

// kernel: segnet_forward.7
= control target key start
LH: loop header
LB: loop body
LE: loop exit
PB: predicated region body
PF: predicated region fallthrough
CT: control target
= control target key end

     0   :  { %s1399_s1 = inlined_call_operand.vmem [shape: bf16[1,1024,128], index: 1, kind: input, shape index: {}]   ;;  %s1400_s0 = inlined_call_operand.vmem [shape: bf16[1,32,1024], index: 0, kind: input, shape index: {}]   ;;  %s1401_s2 = inlined_call_operand.vmem [shape: f32[1,128], index: 2, kind: input, shape index: {}]   ;;  %s1402_s3 = inlined_call_operand.vmem [shape: bf16[1,32,128], index: 3, kind: output, shape index: {}]  }
   0x1   :  { %v1066_v0 = vld [vmem:[%s1399_s1 + $0x40] sm:$0xff]   ;;  %v1070_v4 = vld [vmem:[%s1399_s1 + $0x48] sm:$0xff]   ;;  %v1074_v8 = vld [vmem:[%s1399_s1 + $0x50] sm:$0xff]  }
   0x2   :  { %v1067_v1 = vld [vmem:[%s1399_s1 + $0xc0] sm:$0xff]   ;;  %954 = vmatprep.subr.bf16.mxu0 %v1066_v0  ;;  %v1071_v5 = vld [vmem:[%s1399_s1 + $0xc8] sm:$0xff]   ;;  %v1075_v9 = vld [vmem:[%s1399_s1 + $0xd0] sm:$0xff]  }
   0x3   :  { %v1068_v2 = vld [vmem:[%s1399_s1] sm:$0xff]   ;;  %982 = vmatprep.subr.bf16.mxu1 %v1067_v1  ;;  %v1072_v6 = vld [vmem:[%s1399_s1 + $0x8] sm:$0xff]   ;;  %v1076_v10 = vld [vmem:[%s1399_s1 + $0x10] sm:$0xff]  }
   0x4   :  { %v1069_v3 = vld [vmem:[%s1399_s1 + $0x80] sm:$0xff]   ;;  %955 = vmatpush3.bf16.msra.mxu0 %v1068_v2  ;;  %v1073_v7 = vld [vmem:[%s1399_s1 + $0x88] sm:$0xff]   ;;  %v1077_v11 = vld [vmem:[%s1399_s1 + $0x90] sm:$0xff]  }
   0x5   :  { %983 = vmatpush3.bf16.msra.mxu1 %v1069_v3  ;;  %956 = vmatprep.subr.bf16.mxu0 %v1070_v4  ;;  %v1078_v12 = vld [vmem:[%s1399_s1 + $0x58] sm:$0xff]   ;;  %v1082_v16 = vld [vmem:[%s1399_s1 + $0x60] sm:$0xff]   ;;  %v1086_v20 = vld [vmem:[%s1399_s1 + $0x68] sm:$0xff]  }
   0x6   :  { %984 = vmatprep.subr.bf16.mxu1 %v1071_v5  ;;  %v1079_v13 = vld [vmem:[%s1399_s1 + $0xd8] sm:$0xff]   ;;  %v1083_v17 = vld [vmem:[%s1399_s1 + $0xe0] sm:$0xff]   ;;  %v1087_v21 = vld [vmem:[%s1399_s1 + $0xe8] sm:$0xff]  }
   0x7   :  { %v1080_v14 = vld [vmem:[%s1399_s1 + $0x18] sm:$0xff]   ;;  %v1084_v18 = vld [vmem:[%s1399_s1 + $0x20] sm:$0xff]   ;;  %v1088_v22 = vld [vmem:[%s1399_s1 + $0x28] sm:$0xff]  }
   0x8   :  { %957 = vmatpush3.bf16.msra.mxu0 %v1072_v6  ;;  %v1081_v15 = vld [vmem:[%s1399_s1 + $0x98] sm:$0xff]   ;;  %v1085_v19 = vld [vmem:[%s1399_s1 + $0xa0] sm:$0xff]   ;;  %v1089_v23 = vld [vmem:[%s1399_s1 + $0xa8] sm:$0xff]  }
   0x9   :  { %985 = vmatpush3.bf16.msra.mxu1 %v1073_v7  ;;  %958 = vmatprep.subr.bf16.mxu0 %v1074_v8  ;;  %v1090_v24 = vld [vmem:[%s1399_s1 + $0x70] sm:$0xff]   ;;  %v1094_v28 = vld [vmem:[%s1399_s1 + $0x78] sm:$0xff]   ;;  %v15_v32 = vld [vmem:[%s1400_s0] sm:$0xff] }
   0xa   :  { %986 = vmatprep.subr.bf16.mxu1 %v1075_v9  ;;  %v1091_v25 = vld [vmem:[%s1399_s1 + $0xf0] sm:$0xff]   ;;  %v1095_v29 = vld [vmem:[%s1399_s1 + $0xf8] sm:$0xff]   ;;  %v19_v33 = vld [vmem:[%s1400_s0 + $0x20] sm:$0xff] }
   0xb   :  { %v1092_v26 = vld [vmem:[%s1399_s1 + $0x30] sm:$0xff]   ;;  %v1096_v30 = vld [vmem:[%s1399_s1 + $0x38] sm:$0xff]   ;;  %v16_v34 = vld [vmem:[%s1400_s0 + $0x8] sm:$0xff]  ;;  %v855_v35 = vcombine.low %v15_v32, %v19_v33  ;;  %v856_v36 = vcombine.high %v15_v32, %v19_v33 }
   0xc   :  { %959 = vmatpush3.bf16.msra.mxu0 %v1076_v10  ;;  %v1093_v27 = vld [vmem:[%s1399_s1 + $0xb0] sm:$0xff]   ;;  %v1097_v31 = vld [vmem:[%s1399_s1 + $0xb8] sm:$0xff]   ;;  %v20_v37 = vld [vmem:[%s1400_s0 + $0x28] sm:$0xff] }
   0xd   :  { %987 = vmatpush3.bf16.msra.mxu1 %v1077_v11  ;;  %960 = vmatprep.subr.bf16.mxu0 %v1078_v12  ;;  %v857_v38 = vcombine.low %v16_v34, %v20_v37  ;;  %v858_v39 = vcombine.high %v16_v34, %v20_v37  ;;  %v1098_v40 = vld [vmem:[%s1399_s1 + $0x140] sm:$0xff]   ;;  %v1102_v44 = vld [vmem:[%s1399_s1 + $0x148] sm:$0xff]   ;;  %v1106_v48 = vld [vmem:[%s1399_s1 + $0x150] sm:$0xff]  }
   0xe   :  { %988 = vmatprep.subr.bf16.mxu1 %v1079_v13  ;;  %662 = vmatprep.mubr.bf16.mxu0 %v856_v36  ;;  %v1099_v41 = vld [vmem:[%s1399_s1 + $0x1c0] sm:$0xff]   ;;  %v1103_v45 = vld [vmem:[%s1399_s1 + $0x1c8] sm:$0xff]   ;;  %v1107_v49 = vld [vmem:[%s1399_s1 + $0x1d0] sm:$0xff]  }
   0xf   :  { %711 = vmatprep.mubr.bf16.mxu1 %v858_v39  ;;  %v1100_v42 = vld [vmem:[%s1399_s1 + $0x100] sm:$0xff]   ;;  %v1104_v46 = vld [vmem:[%s1399_s1 + $0x108] sm:$0xff]   ;;  %v1108_v50 = vld [vmem:[%s1399_s1 + $0x110] sm:$0xff]  }
  0x10   :  { %961 = vmatpush3.bf16.msra.mxu0 %v1080_v14  ;;  %v1101_v43 = vld [vmem:[%s1399_s1 + $0x180] sm:$0xff]   ;;  %v1105_v47 = vld [vmem:[%s1399_s1 + $0x188] sm:$0xff]   ;;  %v1109_v51 = vld [vmem:[%s1399_s1 + $0x190] sm:$0xff]  }
  0x11   :  { %989 = vmatpush3.bf16.msra.mxu1 %v1081_v15  ;;  %962 = vmatprep.subr.bf16.mxu0 %v1082_v16  ;;  %v1110_v52 = vld [vmem:[%s1399_s1 + $0x158] sm:$0xff]   ;;  %v1114_v56 = vld [vmem:[%s1399_s1 + $0x160] sm:$0xff]   ;;  %v1118_v63 = vld [vmem:[%s1399_s1 + $0x168] sm:$0xff]  }
  0x12   :  { %990 = vmatprep.subr.bf16.mxu1 %v1083_v17  ;;  %v1111_v53 = vld [vmem:[%s1399_s1 + $0x1d8] sm:$0xff]   ;;  %v1115_v57 = vld [vmem:[%s1399_s1 + $0x1e0] sm:$0xff]   ;;  %v1119_v1 = vld [vmem:[%s1399_s1 + $0x1e8] sm:$0xff]  }
  0x13   :  { %v1112_v54 = vld [vmem:[%s1399_s1 + $0x118] sm:$0xff]   ;;  %v1116_v58 = vld [vmem:[%s1399_s1 + $0x120] sm:$0xff]   ;;  %v1120_v2 = vld [vmem:[%s1399_s1 + $0x128] sm:$0xff]  }
  0x14   :  { %963 = vmatpush3.bf16.msra.mxu0 %v1084_v18  ;;  %v1113_v55 = vld [vmem:[%s1399_s1 + $0x198] sm:$0xff]   ;;  %v1117_v59 = vld [vmem:[%s1399_s1 + $0x1a0] sm:$0xff]   ;;  %v1121_v3 = vld [vmem:[%s1399_s1 + $0x1a8] sm:$0xff]  }
  0x15   :  { %991 = vmatpush3.bf16.msra.mxu1 %v1085_v19  ;;  %964 = vmatprep.subr.bf16.mxu0 %v1086_v20  ;;  %v23_v60 = vld [vmem:[%s1400_s0 + $0x40] sm:$0xff]  ;;  %v24_v4 = vld [vmem:[%s1400_s0 + $0x48] sm:$0xff]  ;;  %v1122_v8 = vld [vmem:[%s1399_s1 + $0x170] sm:$0xff]  }
  0x16   :  { %992 = vmatprep.subr.bf16.mxu1 %v1087_v21  ;;  %v27_v61 = vld [vmem:[%s1400_s0 + $0x60] sm:$0xff]  ;;  %v28_v5 = vld [vmem:[%s1400_s0 + $0x68] sm:$0xff]  ;;  %v1123_v9 = vld [vmem:[%s1399_s1 + $0x1f0] sm:$0xff]  }
  0x17   :  { %v864_v62 = vcombine.high %v23_v60, %v27_v61  ;;  %v863_v0 = vcombine.low %v23_v60, %v27_v61  ;;  %v866_v6 = vcombine.high %v24_v4, %v28_v5  ;;  %v865_v7 = vcombine.low %v24_v4, %v28_v5  ;;  %v1124_v10 = vld [vmem:[%s1399_s1 + $0x130] sm:$0xff]   ;;  %v1126_v12 = vld [vmem:[%s1399_s1 + $0x178] sm:$0xff]   ;;  %v854_v34 = vld [vmem:[%s1401_s2] ss:$0 sm:$0xff] }
  0x18   :  { %965 = vmatpush3.bf16.msra.mxu0 %v1088_v22  ;;  %v1125_v11 = vld [vmem:[%s1399_s1 + $0x1b0] sm:$0xff]   ;;  %v1127_v13 = vld [vmem:[%s1399_s1 + $0x1f8] sm:$0xff]  }
  0x19   :  { %993 = vmatpush3.bf16.msra.mxu1 %v1089_v23  ;;  %966 = vmatprep.subr.bf16.mxu0 %v1090_v24  ;;  %v1128_v14 = vld [vmem:[%s1399_s1 + $0x138] sm:$0xff]   ;;  %v17_v16 = vld [vmem:[%s1400_s0 + $0x10] sm:$0xff] }
  0x1a   :  { %994 = vmatprep.subr.bf16.mxu1 %v1091_v25  ;;  %v1129_v15 = vld [vmem:[%s1399_s1 + $0x1b8] sm:$0xff]   ;;  %v21_v17 = vld [vmem:[%s1400_s0 + $0x30] sm:$0xff] }
  0x1b   :  { %v18_v18 = vld [vmem:[%s1400_s0 + $0x18] sm:$0xff]  ;;  %v859_v20 = vcombine.low %v17_v16, %v21_v17  ;;  %v860_v21 = vcombine.high %v17_v16, %v21_v17  ;;  %v25_v24 = vld [vmem:[%s1400_s0 + $0x50] sm:$0xff] }
  0x1c   :  { %967 = vmatpush3.bf16.msra.mxu0 %v1092_v26  ;;  %v22_v19 = vld [vmem:[%s1400_s0 + $0x38] sm:$0xff]  ;;  %v29_v25 = vld [vmem:[%s1400_s0 + $0x70] sm:$0xff] }
  0x1d   :  { %995 = vmatpush3.bf16.msra.mxu1 %v1093_v27  ;;  %968 = vmatprep.subr.bf16.mxu0 %v1094_v28  ;;  %v861_v22 = vcombine.low %v18_v18, %v22_v19  ;;  %v862_v23 = vcombine.high %v18_v18, %v22_v19  ;;  %v26_v26 = vld [vmem:[%s1400_s0 + $0x58] sm:$0xff]  ;;  %v868_v27 = vcombine.high %v25_v24, %v29_v25 }
  0x1e   :  { %996 = vmatprep.subr.bf16.mxu1 %v1095_v29  ;;  %v30_v28 = vld [vmem:[%s1400_s0 + $0x78] sm:$0xff] }
  0x1f   :  { %v870_v29 = vcombine.high %v26_v26, %v30_v28 }
  0x20   :  { %969 = vmatpush3.bf16.msra.mxu0 %v1096_v30  ;;  %v867_v30 = vcombine.low %v25_v24, %v29_v25 }
  0x21   :  { %997 = vmatpush3.bf16.msra.mxu1 %v1097_v31  ;;  %1010 = vmatprep.subr.bf16.mxu0 %v1098_v40  ;;  %v869_v31 = vcombine.low %v26_v26, %v30_v28 }
  0x22   :  { %1038 = vmatprep.subr.bf16.mxu1 %v1099_v41 }
  0x23   :  { %663 = vmatmul.mubr.bf16.vlgmr.msra.gmra.mrb[0].mxu0 %v855_v35 }
  0x24   :  { %712 = vmatmul.mubr.bf16.vlgmr.msra.gmra.mrb[0].mxu1 %v857_v38  ;;  %1011 = vmatpush3.bf16.msra.mxu0 %v1100_v42 }
  0x25   :  { %1039 = vmatpush3.bf16.msra.mxu1 %v1101_v43  ;;  %1012 = vmatprep.subr.bf16.mxu0 %v1102_v44 }
  0x26   :  { %1040 = vmatprep.subr.bf16.mxu1 %v1103_v45  ;;  %670 = vmatprep.mubr.bf16.mxu0 %v864_v62 }
  0x27   :  { %719 = vmatprep.mubr.bf16.mxu1 %v866_v6 }
  0x28   :  { %1013 = vmatpush3.bf16.msra.mxu0 %v1104_v46 }
  0x29   :  { %1041 = vmatpush3.bf16.msra.mxu1 %v1105_v47  ;;  %1014 = vmatprep.subr.bf16.mxu0 %v1106_v48 }
  0x2a   :  { %1042 = vmatprep.subr.bf16.mxu1 %v1107_v49 }
  0x2b   :  { %671 = vmatmul.mubr.bf16.gmra.mrb[4].mxu0 %v863_v0 }
  0x2c   :  { %1015 = vmatpush3.bf16.msra.mxu0 %v1108_v50  ;;  %720 = vmatmul.mubr.bf16.gmra.mrb[4].mxu1 %v865_v7 }
  0x2d   :  { %1043 = vmatpush3.bf16.msra.mxu1 %v1109_v51  ;;  %1016 = vmatprep.subr.bf16.mxu0 %v1110_v52 }
  0x2e   :  { %1044 = vmatprep.subr.bf16.mxu1 %v1111_v53  ;;  %760 = vmatprep.mubr.bf16.mxu0 %v860_v21 }
  0x2f   :  { %809 = vmatprep.mubr.bf16.mxu1 %v862_v23 }
  0x30   :  { %1017 = vmatpush3.bf16.msra.mxu0 %v1112_v54 }
  0x31   :  { %1045 = vmatpush3.bf16.msra.mxu1 %v1113_v55  ;;  %1018 = vmatprep.subr.bf16.mxu0 %v1114_v56 }
  0x32   :  { %1046 = vmatprep.subr.bf16.mxu1 %v1115_v57 }
  0x34   :  { %1019 = vmatpush3.bf16.msra.mxu0 %v1116_v58 }
  0x35   :  { %1047 = vmatpush3.bf16.msra.mxu1 %v1117_v59  ;;  %1020 = vmatprep.subr.bf16.mxu0 %v1118_v63 }
  0x36   :  { %1048 = vmatprep.subr.bf16.mxu1 %v1119_v1 }
  0x38   :  { %1021 = vmatpush3.bf16.msra.mxu0 %v1120_v2 }
  0x39   :  { %1049 = vmatpush3.bf16.msra.mxu1 %v1121_v3  ;;  %1022 = vmatprep.subr.bf16.mxu0 %v1122_v8 }
  0x3a   :  { %1050 = vmatprep.subr.bf16.mxu1 %v1123_v9 }
  0x3c   :  { %1023 = vmatpush3.bf16.msra.mxu0 %v1124_v10 }
  0x3d   :  { %1051 = vmatpush3.bf16.msra.mxu1 %v1125_v11  ;;  %1024 = vmatprep.subr.bf16.mxu0 %v1126_v12 }
  0x3e   :  { %1052 = vmatprep.subr.bf16.mxu1 %v1127_v13 }
  0x40   :  { %1025 = vmatpush3.bf16.msra.mxu0 %v1128_v14 }
  0x41   :  { %1053 = vmatpush3.bf16.msra.mxu1 %v1129_v15 }
  0x43   :  { %761 = vmatmul.mubr.bf16.vlgmr.msra.gmra.mrb[8].mxu0 %v859_v20 }
  0x44   :  { %810 = vmatmul.mubr.bf16.vlgmr.msra.gmra.mrb[8].mxu1 %v861_v22  ;;  %768 = vmatprep.mubr.bf16.mxu0 %v868_v27 }
  0x45   :  { %817 = vmatprep.mubr.bf16.mxu1 %v870_v29 }
  0x4b   :  { %769 = vmatmul.mubr.bf16.gmra.mrb[12].mxu0 %v867_v30 }
  0x4c   :  { %818 = vmatmul.mubr.bf16.gmra.mrb[12].mxu1 %v869_v31 }
  0xf6   :  { %v970_v32 = vpop.f32.mrb[0].mxu0 }
  0xf7   :  { %v998_v33 = vpop.f32.mrb[0].mxu1  ;;  %v971_v35 = vpop.f32.mrb[1].mxu0 }
  0xf8   :  { %v972_v36 = vadd.f32 %v971_v35, %v970_v32  ;;  %v999_v37 = vpop.f32.mrb[1].mxu1  ;;  %v973_v38 = vpop.f32.mrb[2].mxu0 }
  0xf9   :  { %v1000_v39 = vadd.f32 %v999_v37, %v998_v33  ;;  %v1001_v40 = vpop.f32.mrb[2].mxu1  ;;  %v974_v41 = vpop.f32.mrb[3].mxu0 }
  0xfa   :  { %v665_v42 = vadd.f32 %v972_v36, %v854_v34  ;;  %v975_v43 = vadd.f32 %v974_v41, %v973_v38  ;;  %v1002_v44 = vpop.f32.mrb[3].mxu1 }
  0xfb   :  { %v1003_v45 = vadd.f32 %v1002_v44, %v1001_v40 }
  0xfc   :  { %v714_v46 = vadd.f32 %v1000_v39, %v665_v42  ;;  %v668_v47 = vadd.f32 %v975_v43, %v854_v34 }
  0xfe   :  { %v717_v48 = vadd.f32 %v1003_v45, %v668_v47  ;;  %v976_v49 = vpop.f32.mrb[4].mxu0 }
  0xff   :  { %v977_v50 = vpop.f32.mrb[5].mxu0  ;;  %v1004_v56 = vpop.f32.mrb[4].mxu1 }
 0x100   :  { %v978_v51 = vadd.f32 %v977_v50, %v976_v49  ;;  %v979_v52 = vpop.f32.mrb[6].mxu0  ;;  %v1005_v57 = vpop.f32.mrb[5].mxu1 }
 0x101   :  { %v980_v53 = vpop.f32.mrb[7].mxu0  ;;  %v1006_v59 = vadd.f32 %v1005_v57, %v1004_v56  ;;  %v1007_v60 = vpop.f32.mrb[6].mxu1 }
 0x102   :  { %v981_v54 = vadd.f32 %v980_v53, %v979_v52  ;;  %v673_v55 = vadd.f32 %v978_v51, %v854_v34  ;;  %v1008_v61 = vpop.f32.mrb[7].mxu1 }
 0x103   :  { %v1009_v63 = vadd.f32 %v1008_v61, %v1007_v60 }
 0x104   :  { %v676_v58 = vadd.f32 %v981_v54, %v854_v34  ;;  %v722_v62 = vadd.f32 %v1006_v59, %v673_v55 }
 0x106   :  { %v725_v0 = vadd.f32 %v1009_v63, %v676_v58 }
 0x116   :  { %v1026_v1 = vpop.f32.mrb[8].mxu0 }
 0x117   :  { %v1054_v2 = vpop.f32.mrb[8].mxu1  ;;  %v1027_v3 = vpop.f32.mrb[9].mxu0 }
 0x118   :  { %v1055_v4 = vpop.f32.mrb[9].mxu1  ;;  %v1028_v5 = vadd.f32 %v1027_v3, %v1026_v1  ;;  %v1029_v7 = vpop.f32.mrb[10].mxu0 }
 0x119   :  { %v1056_v6 = vadd.f32 %v1055_v4, %v1054_v2  ;;  %v1057_v8 = vpop.f32.mrb[10].mxu1  ;;  %v1030_v9 = vpop.f32.mrb[11].mxu0 }
 0x11a   :  { %v1058_v10 = vpop.f32.mrb[11].mxu1  ;;  %v763_v11 = vadd.f32 %v1028_v5, %v714_v46  ;;  %v1031_v12 = vadd.f32 %v1030_v9, %v1029_v7 }
 0x11b   :  { %v1059_v13 = vadd.f32 %v1058_v10, %v1057_v8 }
 0x11c   :  { %v812_v14 = vadd.f32 %v1056_v6, %v763_v11  ;;  %v766_v15 = vadd.f32 %v1031_v12, %v717_v48 }
 0x11e   :  { %v815_v16 = vadd.f32 %v1059_v13, %v766_v15  ;;  %v1032_v17 = vpop.f32.mrb[12].mxu0  ;;  %v826_v21 = vmax.f32 %v812_v14, 0.0 }
 0x11f   :  { %v1060_v18 = vpop.f32.mrb[12].mxu1  ;;  %v1033_v19 = vpop.f32.mrb[13].mxu0 }
 0x120   :  { %v1061_v20 = vpop.f32.mrb[13].mxu1  ;;  %v827_v22 = vmax.f32 %v815_v16, 0.0  ;;  %v1034_v23 = vadd.f32 %v1033_v19, %v1032_v17  ;;  %v1035_v25 = vpop.f32.mrb[14].mxu0 }
 0x121   :  { %v1062_v24 = vadd.f32 %v1061_v20, %v1060_v18  ;;  %v1063_v26 = vpop.f32.mrb[14].mxu1  ;;  %v1036_v27 = vpop.f32.mrb[15].mxu0 }
 0x122   :  { %v1064_v28 = vpop.f32.mrb[15].mxu1  ;;  %v946_v29 = vpack.c.bf16 %v827_v22, %v826_v21  ;;  %v771_v30 = vadd.f32 %v1034_v23, %v722_v62  ;;  %v1037_v31 = vadd.f32 %v1036_v27, %v1035_v25 }
 0x123   :  { %v1065_v32 = vadd.f32 %v1064_v28, %v1063_v26 }
 0x124   :  { %947 = vst [vmem:[%s1402_s3] sm:$0xff] %v946_v29   ;;  %v820_v33 = vadd.f32 %v1062_v24, %v771_v30  ;;  %v774_v34 = vadd.f32 %v1037_v31, %v725_v0 }
 0x126   :  { %v823_v35 = vadd.f32 %v1065_v32, %v774_v34  ;;  %v828_v36 = vmax.f32 %v820_v33, 0.0 }
 0x128   :  { %v829_v37 = vmax.f32 %v823_v35, 0.0 }
 0x12a   :  { %v951_v38 = vpack.c.bf16 %v829_v37, %v828_v36 }
 0x12c   :  { %953 = vst [vmem:[%s1402_s3 + $0x8] sm:$0xff] %v951_v38  }

// kernel: squeeze.5
= control target key start
LH: loop header
LB: loop body
LE: loop exit
PB: predicated region body
PF: predicated region fallthrough
CT: control target
= control target key end

     0   :  { %v126_v6 = vmov 0.0   ;;  %s164_s0 = inlined_call_operand.vmem [shape: bf16[1,8,256], index: 0, kind: input, shape index: {}]   ;;  %s165_s1 = inlined_call_operand.vmem [shape: bf16[2,2,2,256], index: 1, kind: output, shape index: {}]  }
   0x1   :  { %v122_v0 = vld [vmem:[%s164_s0] sm:$0xff]  }
   0x2   :  { %v123_v1 = vunpack.c.l.bf16 %v122_v0  ;;  %v124_v2 = vunpack.c.h.bf16 %v122_v0 }
   0x4   :  { %34 = vst [vmem:[#allocation0] ss:$46 sps:$4 sm:$0xc3] %v123_v1   ;;  %36 = vst [vmem:[#allocation0 + $0xe] ss:$18 sps:$4 sm:$0x3c] %v123_v1  }
   0x5   :  { %44 = vst [vmem:[#allocation0 + $0x8] ss:$46 sps:$4 sm:$0xc3] %v124_v2   ;;  %46 = vst [vmem:[#allocation0 + $0x16] ss:$18 sps:$4 sm:$0x3c] %v124_v2  }
   0xb   :  { %v55_v3 = vld [vmem:[#allocation0] sm:$0x3]  ;;  %v66_v5 = vld [vmem:[#allocation0 + $0x10] sm:$0x3] }
   0xc   :  { %v60_v4 = vld [vmem:[#allocation0 + $0x8] sm:$0x3]  ;;  %v56_v7 = vpack.c.bf16 %v126_v6, %v55_v3  ;;  %v67_v9 = vpack.c.bf16 %v126_v6, %v66_v5  ;;  %v73_v10 = vld [vmem:[#allocation0 + $0x18] sm:$0x3]  ;;  %v80_v11 = vld [vmem:[#allocation0 + $0x20] sm:$0x3] }
   0xd   :  { %v61_v8 = vpack.c.bf16 %v126_v6, %v60_v4  ;;  %v87_v12 = vld [vmem:[#allocation0 + $0x28] sm:$0x3]  ;;  %v74_v13 = vpack.c.bf16 %v126_v6, %v73_v10  ;;  %v81_v14 = vpack.c.bf16 %v126_v6, %v80_v11  ;;  %v94_v16 = vld [vmem:[#allocation0 + $0x30] sm:$0x3]  ;;  %v101_v17 = vld [vmem:[#allocation0 + $0x38] sm:$0x3] }
   0xe   :  { %v88_v15 = vpack.c.bf16 %v126_v6, %v87_v12  ;;  %58 = vst [vmem:[%s165_s1] sm:$0x1] %v56_v7  ;;  %115 = vst [vmem:[%s165_s1 + $0x2] sm:$0x1] %v67_v9  ;;  %v95_v18 = vpack.c.bf16 %v126_v6, %v94_v16  ;;  %v102_v19 = vpack.c.bf16 %v126_v6, %v101_v17 }
   0xf   :  { %114 = vst [vmem:[%s165_s1 + $0x1] sm:$0x1] %v61_v8  ;;  %116 = vst [vmem:[%s165_s1 + $0x3] sm:$0x1] %v74_v13 }
  0x10   :  { %117 = vst [vmem:[%s165_s1 + $0x4] sm:$0x1] %v81_v14  ;;  %118 = vst [vmem:[%s165_s1 + $0x5] sm:$0x1] %v88_v15 }
  0x11   :  { %119 = vst [vmem:[%s165_s1 + $0x6] sm:$0x1] %v95_v18  ;;  %120 = vst [vmem:[%s165_s1 + $0x7] sm:$0x1] %v102_v19 }

// kernel: segnet_forward.9
= control target key start
LH: loop header
LB: loop body
LE: loop exit
PB: predicated region body
PF: predicated region fallthrough
CT: control target
= control target key end

     0   :  { %s1397_s12 = smov 0   ;;  %s1399_s13 = smov 0   ;;  %s1517_s0 = inlined_call_operand.vmem [shape: bf16[4,16,1024], index: 0, kind: input, shape index: {}]   ;;  %s1518_s1 = inlined_call_operand.vmem [shape: bf16[4,1024,128], index: 1, kind: input, shape index: {}]   ;;  %s1519_s2 = inlined_call_operand.vmem [shape: f32[1,128], index: 2, kind: input, shape index: {}]   ;;  %s1520_s3 = inlined_call_operand.vmem [shape: bf16[4,16,128], index: 3, kind: output, shape index: {}]  }
   0x1   :  { %s1401_s14 = smov 0  }
   0x2 LB: > { %s25_s15 = sadd.s32 1, %s1371_s13  ;;  %p1083_p0 = scmp.ge.s32.totalorder %s1375_s14, 1  ;;  %s1375_s14 = sphi %s1401_s14, %s13_s14   ;;  %s1371_s13 = sphi %s1399_s13, %s1522_s13   ;;  %s1367_s12 = sphi %s1397_s12, %s1521_s12  }
   0x3   : > { %p27_p1 = scmp.ge.s32.totalorder %s25_s15, 4  ;;  %p169_p2 = scmp.lt.s32.totalorder %s1375_s14, 5 }
   0x5   : > { %s1524_s15 = smov (%p27_p1, %s25_s15), 0  ;;  %p170_p3 = pnand %p1083_p0, %p169_p2 }
   0x6   : > { %p208_p4 = scmp.lt.s32.totalorder (!%p170_p3), %s1367_s12, 3 }
   0x7   : > { %173 = sbr.rel (%p170_p3) target bundleno = 309 (0x135), region = 32 }
   0xe   : > { %s1526_s12 = smov (!%p208_p4, %s1367_s12), 3 }
   0xf   : > { %s1168_s16 = sshll.u32 %s1526_s12, 9  ;;  %s1167_s20 = sshll.u32 %s1526_s12, 6 }
  0x10   : > { %s1421_s19 = scalar_lea.vmem %s1518_s1, %s1168_s16  ;;  %s1457_s23 = scalar_lea.vmem %s1517_s0, %s1167_s20 }
  0x11   : > { %v1289_v0 = vld [vmem:[%s1421_s19 + $0x40] sm:$0xff]   ;;  %v1293_v4 = vld [vmem:[%s1421_s19 + $0x48] sm:$0xff]   ;;  %v1297_v8 = vld [vmem:[%s1421_s19 + $0x50] sm:$0xff]   ;;  %s1169_s26 = sshll.u32 %s1526_s12, 3 }
  0x12   : > { %v1290_v1 = vld [vmem:[%s1421_s19 + $0xc0] sm:$0xff]   ;;  %1177 = vmatprep.subr.bf16.mxu0 %v1289_v0  ;;  %v1294_v5 = vld [vmem:[%s1421_s19 + $0xc8] sm:$0xff]   ;;  %v1298_v9 = vld [vmem:[%s1421_s19 + $0xd0] sm:$0xff]   ;;  %s231_s29 = scalar_lea.vmem %s1520_s3, %s1169_s26 }
  0x13   : > { %v1291_v2 = vld [vmem:[%s1421_s19] sm:$0xff]   ;;  %1199 = vmatprep.subr.bf16.mxu1 %v1290_v1  ;;  %v1295_v6 = vld [vmem:[%s1421_s19 + $0x8] sm:$0xff]   ;;  %v1299_v10 = vld [vmem:[%s1421_s19 + $0x10] sm:$0xff]  }
  0x14   : > { %v1292_v3 = vld [vmem:[%s1421_s19 + $0x80] sm:$0xff]   ;;  %1178 = vmatpush3.bf16.msra.mxu0 %v1291_v2  ;;  %v1296_v7 = vld [vmem:[%s1421_s19 + $0x88] sm:$0xff]   ;;  %v1300_v11 = vld [vmem:[%s1421_s19 + $0x90] sm:$0xff]  }
  0x15   : > { %1200 = vmatpush3.bf16.msra.mxu1 %v1292_v3  ;;  %1179 = vmatprep.subr.bf16.mxu0 %v1293_v4  ;;  %v1301_v12 = vld [vmem:[%s1421_s19 + $0x58] sm:$0xff]   ;;  %v1305_v16 = vld [vmem:[%s1421_s19 + $0x60] sm:$0xff]   ;;  %v1309_v20 = vld [vmem:[%s1421_s19 + $0x68] sm:$0xff]  }
  0x16   : > { %1201 = vmatprep.subr.bf16.mxu1 %v1294_v5  ;;  %v1302_v13 = vld [vmem:[%s1421_s19 + $0xd8] sm:$0xff]   ;;  %v1306_v17 = vld [vmem:[%s1421_s19 + $0xe0] sm:$0xff]   ;;  %v1310_v21 = vld [vmem:[%s1421_s19 + $0xe8] sm:$0xff]  }
  0x17   : > { %v1303_v14 = vld [vmem:[%s1421_s19 + $0x18] sm:$0xff]   ;;  %v1307_v18 = vld [vmem:[%s1421_s19 + $0x20] sm:$0xff]   ;;  %v1311_v22 = vld [vmem:[%s1421_s19 + $0x28] sm:$0xff]  }
  0x18   : > { %1180 = vmatpush3.bf16.msra.mxu0 %v1295_v6  ;;  %v1304_v15 = vld [vmem:[%s1421_s19 + $0x98] sm:$0xff]   ;;  %v1308_v19 = vld [vmem:[%s1421_s19 + $0xa0] sm:$0xff]   ;;  %v1312_v23 = vld [vmem:[%s1421_s19 + $0xa8] sm:$0xff]  }
  0x19   : > { %1202 = vmatpush3.bf16.msra.mxu1 %v1296_v7  ;;  %1181 = vmatprep.subr.bf16.mxu0 %v1297_v8  ;;  %v1313_v24 = vld [vmem:[%s1421_s19 + $0x70] sm:$0xff]   ;;  %v1317_v28 = vld [vmem:[%s1421_s19 + $0x78] sm:$0xff]   ;;  %v234_v32 = vld [vmem:[%s1457_s23] sm:$0xff] }
  0x1a   : > { %1203 = vmatprep.subr.bf16.mxu1 %v1298_v9  ;;  %v1314_v25 = vld [vmem:[%s1421_s19 + $0xf0] sm:$0xff]   ;;  %v1318_v29 = vld [vmem:[%s1421_s19 + $0xf8] sm:$0xff]   ;;  %v238_v33 = vld [vmem:[%s1457_s23 + $0x20] sm:$0xff] }
  0x1b   : > { %v1315_v26 = vld [vmem:[%s1421_s19 + $0x30] sm:$0xff]   ;;  %v1319_v30 = vld [vmem:[%s1421_s19 + $0x38] sm:$0xff]   ;;  %v235_v34 = vld [vmem:[%s1457_s23 + $0x8] sm:$0xff]  ;;  %v1091_v35 = vcombine.low %v234_v32, %v238_v33  ;;  %v1092_v36 = vcombine.high %v234_v32, %v238_v33 }
  0x1c   : > { %1182 = vmatpush3.bf16.msra.mxu0 %v1299_v10  ;;  %v1316_v27 = vld [vmem:[%s1421_s19 + $0xb0] sm:$0xff]   ;;  %v1320_v31 = vld [vmem:[%s1421_s19 + $0xb8] sm:$0xff]   ;;  %v239_v37 = vld [vmem:[%s1457_s23 + $0x28] sm:$0xff] }
  0x1d   : > { %1204 = vmatpush3.bf16.msra.mxu1 %v1300_v11  ;;  %1183 = vmatprep.subr.bf16.mxu0 %v1301_v12  ;;  %v1093_v38 = vcombine.low %v235_v34, %v239_v37  ;;  %v1094_v39 = vcombine.high %v235_v34, %v239_v37  ;;  %v1321_v40 = vld [vmem:[%s1421_s19 + $0x140] sm:$0xff]   ;;  %v1325_v44 = vld [vmem:[%s1421_s19 + $0x148] sm:$0xff]   ;;  %v1329_v48 = vld [vmem:[%s1421_s19 + $0x150] sm:$0xff]  }
  0x1e   : > { %1205 = vmatprep.subr.bf16.mxu1 %v1302_v13  ;;  %833 = vmatprep.mubr.bf16.mxu0 %v1092_v36  ;;  %v1322_v41 = vld [vmem:[%s1421_s19 + $0x1c0] sm:$0xff]   ;;  %v1326_v45 = vld [vmem:[%s1421_s19 + $0x1c8] sm:$0xff]   ;;  %v1330_v49 = vld [vmem:[%s1421_s19 + $0x1d0] sm:$0xff]  }
  0x1f   : > { %874 = vmatprep.mubr.bf16.mxu1 %v1094_v39  ;;  %v1323_v42 = vld [vmem:[%s1421_s19 + $0x100] sm:$0xff]   ;;  %v1327_v46 = vld [vmem:[%s1421_s19 + $0x108] sm:$0xff]   ;;  %v1331_v50 = vld [vmem:[%s1421_s19 + $0x110] sm:$0xff]  }
  0x20   : > { %1184 = vmatpush3.bf16.msra.mxu0 %v1303_v14  ;;  %v1324_v43 = vld [vmem:[%s1421_s19 + $0x180] sm:$0xff]   ;;  %v1328_v47 = vld [vmem:[%s1421_s19 + $0x188] sm:$0xff]   ;;  %v1332_v51 = vld [vmem:[%s1421_s19 + $0x190] sm:$0xff]  }
  0x21   : > { %1206 = vmatpush3.bf16.msra.mxu1 %v1304_v15  ;;  %1185 = vmatprep.subr.bf16.mxu0 %v1305_v16  ;;  %v1333_v52 = vld [vmem:[%s1421_s19 + $0x158] sm:$0xff]   ;;  %v1337_v56 = vld [vmem:[%s1421_s19 + $0x160] sm:$0xff]   ;;  %v1341_v60 = vld [vmem:[%s1421_s19 + $0x168] sm:$0xff]  }
  0x22   : > { %1207 = vmatprep.subr.bf16.mxu1 %v1306_v17  ;;  %v1334_v53 = vld [vmem:[%s1421_s19 + $0x1d8] sm:$0xff]   ;;  %v1338_v57 = vld [vmem:[%s1421_s19 + $0x1e0] sm:$0xff]   ;;  %v1342_v61 = vld [vmem:[%s1421_s19 + $0x1e8] sm:$0xff]  }
  0x23   : > { %v1335_v54 = vld [vmem:[%s1421_s19 + $0x118] sm:$0xff]   ;;  %v1339_v58 = vld [vmem:[%s1421_s19 + $0x120] sm:$0xff]   ;;  %v1343_v62 = vld [vmem:[%s1421_s19 + $0x128] sm:$0xff]  }
  0x24   : > { %1186 = vmatpush3.bf16.msra.mxu0 %v1307_v18  ;;  %v1336_v55 = vld [vmem:[%s1421_s19 + $0x198] sm:$0xff]   ;;  %v1340_v59 = vld [vmem:[%s1421_s19 + $0x1a0] sm:$0xff]   ;;  %v1344_v63 = vld [vmem:[%s1421_s19 + $0x1a8] sm:$0xff]  }
  0x25   : > { %1208 = vmatpush3.bf16.msra.mxu1 %v1308_v19  ;;  %1187 = vmatprep.subr.bf16.mxu0 %v1309_v20  ;;  %v1345_v0 = vld [vmem:[%s1421_s19 + $0x170] sm:$0xff]   ;;  %v1349_v4 = vld [vmem:[%s1421_s19 + $0x178] sm:$0xff]   ;;  %v1090_v18 = vld [vmem:[%s1519_s2] ss:$0 sm:$0xff] }
  0x26   : > { %1209 = vmatprep.subr.bf16.mxu1 %v1310_v21  ;;  %v1346_v1 = vld [vmem:[%s1421_s19 + $0x1f0] sm:$0xff]   ;;  %v1350_v5 = vld [vmem:[%s1421_s19 + $0x1f8] sm:$0xff]  }
  0x27   : > { %v1347_v2 = vld [vmem:[%s1421_s19 + $0x130] sm:$0xff]   ;;  %v1351_v6 = vld [vmem:[%s1421_s19 + $0x138] sm:$0xff]  }
  0x28   : > { %1188 = vmatpush3.bf16.msra.mxu0 %v1311_v22  ;;  %v1348_v3 = vld [vmem:[%s1421_s19 + $0x1b0] sm:$0xff]   ;;  %v1352_v7 = vld [vmem:[%s1421_s19 + $0x1b8] sm:$0xff]  }
  0x29   : > { %1210 = vmatpush3.bf16.msra.mxu1 %v1312_v23  ;;  %1189 = vmatprep.subr.bf16.mxu0 %v1313_v24  ;;  %v236_v8 = vld [vmem:[%s1457_s23 + $0x10] sm:$0xff]  ;;  %v237_v12 = vld [vmem:[%s1457_s23 + $0x18] sm:$0xff] }
  0x2a   : > { %1211 = vmatprep.subr.bf16.mxu1 %v1314_v25  ;;  %v240_v9 = vld [vmem:[%s1457_s23 + $0x30] sm:$0xff]  ;;  %v241_v13 = vld [vmem:[%s1457_s23 + $0x38] sm:$0xff] }
  0x2b   : > { %v1095_v10 = vcombine.low %v236_v8, %v240_v9  ;;  %v1096_v11 = vcombine.high %v236_v8, %v240_v9  ;;  %v1097_v14 = vcombine.low %v237_v12, %v241_v13  ;;  %v1098_v15 = vcombine.high %v237_v12, %v241_v13 }
  0x2c   : > { %1190 = vmatpush3.bf16.msra.mxu0 %v1315_v26 }
  0x2d   : > { %1212 = vmatpush3.bf16.msra.mxu1 %v1316_v27  ;;  %1191 = vmatprep.subr.bf16.mxu0 %v1317_v28 }
  0x2e   : > { %1213 = vmatprep.subr.bf16.mxu1 %v1318_v29 }
  0x30   : > { %1192 = vmatpush3.bf16.msra.mxu0 %v1319_v30 }
  0x31   : > { %1214 = vmatpush3.bf16.msra.mxu1 %v1320_v31  ;;  %1221 = vmatprep.subr.bf16.mxu0 %v1321_v40 }
  0x32   : > { %1243 = vmatprep.subr.bf16.mxu1 %v1322_v41 }
  0x33   : > { %834 = vmatmul.mubr.bf16.vlgmr.msra.gmra.mrb[0].mxu0 %v1091_v35 }
  0x34   : > { %875 = vmatmul.mubr.bf16.vlgmr.msra.gmra.mrb[0].mxu1 %v1093_v38  ;;  %1222 = vmatpush3.bf16.msra.mxu0 %v1323_v42 }
  0x35   : > { %1244 = vmatpush3.bf16.msra.mxu1 %v1324_v43  ;;  %1223 = vmatprep.subr.bf16.mxu0 %v1325_v44 }
  0x36   : > { %1245 = vmatprep.subr.bf16.mxu1 %v1326_v45  ;;  %915 = vmatprep.mubr.bf16.mxu0 %v1096_v11 }
  0x37   : > { %956 = vmatprep.mubr.bf16.mxu1 %v1098_v15 }
  0x38   : > { %1224 = vmatpush3.bf16.msra.mxu0 %v1327_v46 }
  0x39   : > { %1246 = vmatpush3.bf16.msra.mxu1 %v1328_v47  ;;  %1225 = vmatprep.subr.bf16.mxu0 %v1329_v48 }
  0x3a   : > { %1247 = vmatprep.subr.bf16.mxu1 %v1330_v49 }
  0x3c   : > { %1226 = vmatpush3.bf16.msra.mxu0 %v1331_v50 }
  0x3d   : > { %1248 = vmatpush3.bf16.msra.mxu1 %v1332_v51  ;;  %1227 = vmatprep.subr.bf16.mxu0 %v1333_v52 }
  0x3e   : > { %1249 = vmatprep.subr.bf16.mxu1 %v1334_v53 }
  0x40   : > { %1228 = vmatpush3.bf16.msra.mxu0 %v1335_v54 }
  0x41   : > { %1250 = vmatpush3.bf16.msra.mxu1 %v1336_v55  ;;  %1229 = vmatprep.subr.bf16.mxu0 %v1337_v56 }
  0x42   : > { %1251 = vmatprep.subr.bf16.mxu1 %v1338_v57 }
  0x44   : > { %1230 = vmatpush3.bf16.msra.mxu0 %v1339_v58 }
  0x45   : > { %1252 = vmatpush3.bf16.msra.mxu1 %v1340_v59  ;;  %1231 = vmatprep.subr.bf16.mxu0 %v1341_v60 }
  0x46   : > { %1253 = vmatprep.subr.bf16.mxu1 %v1342_v61 }
  0x48   : > { %1232 = vmatpush3.bf16.msra.mxu0 %v1343_v62 }
  0x49   : > { %1254 = vmatpush3.bf16.msra.mxu1 %v1344_v63  ;;  %1233 = vmatprep.subr.bf16.mxu0 %v1345_v0 }
  0x4a   : > { %1255 = vmatprep.subr.bf16.mxu1 %v1346_v1 }
  0x4c   : > { %1234 = vmatpush3.bf16.msra.mxu0 %v1347_v2 }
  0x4d   : > { %1256 = vmatpush3.bf16.msra.mxu1 %v1348_v3  ;;  %1235 = vmatprep.subr.bf16.mxu0 %v1349_v4 }
  0x4e   : > { %1257 = vmatprep.subr.bf16.mxu1 %v1350_v5 }
  0x50   : > { %1236 = vmatpush3.bf16.msra.mxu0 %v1351_v6 }
  0x51   : > { %1258 = vmatpush3.bf16.msra.mxu1 %v1352_v7 }
  0x53   : > { %916 = vmatmul.mubr.bf16.vlgmr.msra.gmra.mrb[4].mxu0 %v1095_v10 }
  0x54   : > { %957 = vmatmul.mubr.bf16.vlgmr.msra.gmra.mrb[4].mxu1 %v1097_v14 }
 0x106   : > { %v1193_v16 = vpop.f32.mrb[0].mxu0 }
 0x107   : > { %v1215_v17 = vpop.f32.mrb[0].mxu1  ;;  %v1194_v19 = vpop.f32.mrb[1].mxu0 }
 0x108   : > { %v1195_v20 = vadd.f32 %v1194_v19, %v1193_v16  ;;  %v1216_v21 = vpop.f32.mrb[1].mxu1  ;;  %v1196_v22 = vpop.f32.mrb[2].mxu0 }
 0x109   : > { %v1217_v23 = vadd.f32 %v1216_v21, %v1215_v17  ;;  %v1218_v24 = vpop.f32.mrb[2].mxu1  ;;  %v1197_v25 = vpop.f32.mrb[3].mxu0 }
 0x10a   : > { %v836_v26 = vadd.f32 %v1195_v20, %v1090_v18  ;;  %v1198_v27 = vadd.f32 %v1197_v25, %v1196_v22  ;;  %v1219_v28 = vpop.f32.mrb[3].mxu1 }
 0x10b   : > { %v1220_v29 = vadd.f32 %v1219_v28, %v1218_v24 }
 0x10c   : > { %v877_v30 = vadd.f32 %v1217_v23, %v836_v26  ;;  %v839_v31 = vadd.f32 %v1198_v27, %v1090_v18 }
 0x10e   : > { %v880_v32 = vadd.f32 %v1220_v29, %v839_v31 }
 0x126   : > { %v1237_v33 = vpop.f32.mrb[4].mxu0 }
 0x127   : > { %v1259_v34 = vpop.f32.mrb[4].mxu1  ;;  %v1238_v35 = vpop.f32.mrb[5].mxu0 }
 0x128   : > { %v1239_v36 = vadd.f32 %v1238_v35, %v1237_v33  ;;  %v1260_v37 = vpop.f32.mrb[5].mxu1  ;;  %v1240_v38 = vpop.f32.mrb[6].mxu0 }
 0x129   : > { %v1261_v39 = vadd.f32 %v1260_v37, %v1259_v34  ;;  %v1262_v40 = vpop.f32.mrb[6].mxu1  ;;  %v1241_v41 = vpop.f32.mrb[7].mxu0 }
 0x12a   : > { %v918_v42 = vadd.f32 %v1239_v36, %v877_v30  ;;  %v1242_v43 = vadd.f32 %v1241_v41, %v1240_v38  ;;  %v1263_v44 = vpop.f32.mrb[7].mxu1 }
 0x12b   : > { %v1264_v45 = vadd.f32 %v1263_v44, %v1262_v40 }
 0x12c   : > { %v959_v46 = vadd.f32 %v1261_v39, %v918_v42  ;;  %v921_v47 = vadd.f32 %v1242_v43, %v880_v32 }
 0x12e   : > { %v962_v48 = vadd.f32 %v1264_v45, %v921_v47  ;;  %v965_v49 = vmax.f32 %v959_v46, 0.0 }
 0x130   : > { %v966_v50 = vmax.f32 %v962_v48, 0.0 }
 0x132   : > { %v1175_v51 = vpack.c.bf16 %v966_v50, %v965_v49 }
 0x134   : > { %1176 = vst [vmem:[%s231_s29] sm:$0xff] %v1175_v51  }
 0x135 PF: > { %s13_s14 = sadd.s32 1, %s1375_s14   ;;  %s1521_s12 = smov %s1371_s13 }
 0x136   : > { %p10_p5 = scmp.ge.s32.totalorder %s13_s14, 6   ;;  %s1522_s13 = smov %s1524_s15 }
 0x138   :  { %12 = sbr.rel (!%p10_p5) target bundleno = 2 (0x2), region = 65 }

// kernel: segnet_forward.8
= control target key start
LH: loop header
LB: loop body
LE: loop exit
PB: predicated region body
PF: predicated region fallthrough
CT: control target
= control target key end

     0   :  { %s3609_s1 = inlined_call_operand.vmem [shape: bf16[1,2048,256], index: 1, kind: input, shape index: {}]   ;;  %s3610_s0 = inlined_call_operand.vmem [shape: bf16[1,16,2048], index: 0, kind: input, shape index: {}]   ;;  %s3611_s2 = inlined_call_operand.vmem [shape: f32[1,256], index: 2, kind: input, shape index: {}]   ;;  %s3612_s3 = inlined_call_operand.vmem [shape: bf16[1,16,256], index: 3, kind: output, shape index: {}]  }
   0x1   :  { %v2332_v0 = vld [vmem:[%s3609_s1 + $0x4] ss:$8 sps:$4 sm:$0xff]   ;;  %v2336_v2 = vld [vmem:[%s3609_s1] ss:$8 sps:$4 sm:$0xff]   ;;  %v2338_v4 = vld [vmem:[%s3609_s1 + $0x14] ss:$8 sps:$4 sm:$0xff]  }
   0x2   :  { %v2334_v1 = vld [vmem:[%s3609_s1 + $0x404] ss:$8 sps:$4 sm:$0xff]   ;;  %1658 = vmatprep.subr.bf16.mxu1 %v2332_v0  ;;  %v2337_v3 = vld [vmem:[%s3609_s1 + $0x400] ss:$8 sps:$4 sm:$0xff]   ;;  %v2340_v5 = vld [vmem:[%s3609_s1 + $0x414] ss:$8 sps:$4 sm:$0xff]  }
   0x3   :  { %1830 = vmatprep.subr.bf16.mxu0 %v2334_v1  ;;  %1659 = vmatpush1.bf16.msra.mxu1 %v2336_v2  ;;  %v2342_v6 = vld [vmem:[%s3609_s1 + $0x10] ss:$8 sps:$4 sm:$0xff]   ;;  %v2344_v8 = vld [vmem:[%s3609_s1 + $0x24] ss:$8 sps:$4 sm:$0xff]   ;;  %v2348_v10 = vld [vmem:[%s3609_s1 + $0x20] ss:$8 sps:$4 sm:$0xff]  }
   0x4   :  { %1831 = vmatpush1.bf16.msra.mxu0 %v2337_v3  ;;  %1660 = vmatprep.subr.bf16.mxu1 %v2338_v4  ;;  %v2343_v7 = vld [vmem:[%s3609_s1 + $0x410] ss:$8 sps:$4 sm:$0xff]   ;;  %v2346_v9 = vld [vmem:[%s3609_s1 + $0x424] ss:$8 sps:$4 sm:$0xff]   ;;  %v2349_v11 = vld [vmem:[%s3609_s1 + $0x420] ss:$8 sps:$4 sm:$0xff]  }
   0x5   :  { %1832 = vmatprep.subr.bf16.mxu0 %v2340_v5  ;;  %v2350_v12 = vld [vmem:[%s3609_s1 + $0x34] ss:$8 sps:$4 sm:$0xff]   ;;  %v2354_v14 = vld [vmem:[%s3609_s1 + $0x30] ss:$8 sps:$4 sm:$0xff]   ;;  %v2356_v16 = vld [vmem:[%s3609_s1 + $0x44] ss:$8 sps:$4 sm:$0xff]  }
   0x6   :  { %v2352_v13 = vld [vmem:[%s3609_s1 + $0x434] ss:$8 sps:$4 sm:$0xff]   ;;  %v2355_v15 = vld [vmem:[%s3609_s1 + $0x430] ss:$8 sps:$4 sm:$0xff]   ;;  %v2358_v17 = vld [vmem:[%s3609_s1 + $0x444] ss:$8 sps:$4 sm:$0xff]  }
   0x7   :  { %1661 = vmatpush1.bf16.msra.mxu1 %v2342_v6  ;;  %v2360_v18 = vld [vmem:[%s3609_s1 + $0x40] ss:$8 sps:$4 sm:$0xff]   ;;  %v2362_v20 = vld [vmem:[%s3609_s1 + $0x54] ss:$8 sps:$4 sm:$0xff]   ;;  %v2366_v22 = vld [vmem:[%s3609_s1 + $0x50] ss:$8 sps:$4 sm:$0xff]  }
   0x8   :  { %1833 = vmatpush1.bf16.msra.mxu0 %v2343_v7  ;;  %1662 = vmatprep.subr.bf16.mxu1 %v2344_v8  ;;  %v2361_v19 = vld [vmem:[%s3609_s1 + $0x440] ss:$8 sps:$4 sm:$0xff]   ;;  %v2364_v21 = vld [vmem:[%s3609_s1 + $0x454] ss:$8 sps:$4 sm:$0xff]   ;;  %v2367_v23 = vld [vmem:[%s3609_s1 + $0x450] ss:$8 sps:$4 sm:$0xff]  }
   0x9   :  { %1834 = vmatprep.subr.bf16.mxu0 %v2346_v9  ;;  %v2368_v24 = vld [vmem:[%s3609_s1 + $0x64] ss:$8 sps:$4 sm:$0xff]   ;;  %v2372_v26 = vld [vmem:[%s3609_s1 + $0x60] ss:$8 sps:$4 sm:$0xff]   ;;  %v2374_v28 = vld [vmem:[%s3609_s1 + $0x74] ss:$8 sps:$4 sm:$0xff]  }
   0xa   :  { %v2370_v25 = vld [vmem:[%s3609_s1 + $0x464] ss:$8 sps:$4 sm:$0xff]   ;;  %v2373_v27 = vld [vmem:[%s3609_s1 + $0x460] ss:$8 sps:$4 sm:$0xff]   ;;  %v2376_v29 = vld [vmem:[%s3609_s1 + $0x474] ss:$8 sps:$4 sm:$0xff]  }
   0xb   :  { %1663 = vmatpush1.bf16.msra.mxu1 %v2348_v10  ;;  %v2378_v30 = vld [vmem:[%s3609_s1 + $0x70] ss:$8 sps:$4 sm:$0xff]   ;;  %v2380_v32 = vld [vmem:[%s3609_s1 + $0x84] ss:$8 sps:$4 sm:$0xff]   ;;  %v2384_v34 = vld [vmem:[%s3609_s1 + $0x80] ss:$8 sps:$4 sm:$0xff]  }
   0xc   :  { %1835 = vmatpush1.bf16.msra.mxu0 %v2349_v11  ;;  %1664 = vmatprep.subr.bf16.mxu1 %v2350_v12  ;;  %v2379_v31 = vld [vmem:[%s3609_s1 + $0x470] ss:$8 sps:$4 sm:$0xff]   ;;  %v2382_v33 = vld [vmem:[%s3609_s1 + $0x484] ss:$8 sps:$4 sm:$0xff]   ;;  %v2385_v35 = vld [vmem:[%s3609_s1 + $0x480] ss:$8 sps:$4 sm:$0xff]  }
   0xd   :  { %1836 = vmatprep.subr.bf16.mxu0 %v2352_v13  ;;  %v2386_v36 = vld [vmem:[%s3609_s1 + $0x94] ss:$8 sps:$4 sm:$0xff]   ;;  %v2390_v38 = vld [vmem:[%s3609_s1 + $0x90] ss:$8 sps:$4 sm:$0xff]   ;;  %v2392_v40 = vld [vmem:[%s3609_s1 + $0xa4] ss:$8 sps:$4 sm:$0xff]  }
   0xe   :  { %v2388_v37 = vld [vmem:[%s3609_s1 + $0x494] ss:$8 sps:$4 sm:$0xff]   ;;  %v2391_v39 = vld [vmem:[%s3609_s1 + $0x490] ss:$8 sps:$4 sm:$0xff]   ;;  %v2394_v41 = vld [vmem:[%s3609_s1 + $0x4a4] ss:$8 sps:$4 sm:$0xff]  }
   0xf   :  { %1665 = vmatpush1.bf16.msra.mxu1 %v2354_v14  ;;  %v2396_v42 = vld [vmem:[%s3609_s1 + $0xa0] ss:$8 sps:$4 sm:$0xff]   ;;  %v2398_v44 = vld [vmem:[%s3609_s1 + $0xb4] ss:$8 sps:$4 sm:$0xff]   ;;  %v2402_v46 = vld [vmem:[%s3609_s1 + $0xb0] ss:$8 sps:$4 sm:$0xff]  }
  0x10   :  { %1837 = vmatpush1.bf16.msra.mxu0 %v2355_v15  ;;  %1666 = vmatprep.subr.bf16.mxu1 %v2356_v16  ;;  %v2397_v43 = vld [vmem:[%s3609_s1 + $0x4a0] ss:$8 sps:$4 sm:$0xff]   ;;  %v2400_v45 = vld [vmem:[%s3609_s1 + $0x4b4] ss:$8 sps:$4 sm:$0xff]   ;;  %v2403_v47 = vld [vmem:[%s3609_s1 + $0x4b0] ss:$8 sps:$4 sm:$0xff]  }
  0x11   :  { %1838 = vmatprep.subr.bf16.mxu0 %v2358_v17  ;;  %v14_v48 = vld [vmem:[%s3610_s0] sm:$0xff]  ;;  %v2410_v58 = vld [vmem:[%s3609_s1 + $0xd4] ss:$8 sps:$4 sm:$0xff]   ;;  %v2414_v60 = vld [vmem:[%s3609_s1 + $0xd0] ss:$8 sps:$4 sm:$0xff]  }
  0x12   :  { %v22_v49 = vld [vmem:[%s3610_s0 + $0x40] sm:$0xff]  ;;  %v2412_v59 = vld [vmem:[%s3609_s1 + $0x4d4] ss:$8 sps:$4 sm:$0xff]   ;;  %v2415_v61 = vld [vmem:[%s3609_s1 + $0x4d0] ss:$8 sps:$4 sm:$0xff]  }
  0x13   :  { %1667 = vmatpush1.bf16.msra.mxu1 %v2360_v18  ;;  %v2404_v50 = vld [vmem:[%s3609_s1 + $0xc4] ss:$8 sps:$4 sm:$0xff]   ;;  %v2025_v52 = vcombine.high %v14_v48, %v22_v49  ;;  %v2408_v56 = vld [vmem:[%s3609_s1 + $0xc0] ss:$8 sps:$4 sm:$0xff]   ;;  %v2422_v2 = vld [vmem:[%s3609_s1 + $0xf4] ss:$8 sps:$4 sm:$0xff]   ;;  %v2024_v8 = vcombine.low %v14_v48, %v22_v49 }
  0x14   :  { %1839 = vmatpush1.bf16.msra.mxu0 %v2361_v19  ;;  %1668 = vmatprep.subr.bf16.mxu1 %v2362_v20  ;;  %v2406_v51 = vld [vmem:[%s3609_s1 + $0x4c4] ss:$8 sps:$4 sm:$0xff]   ;;  %v2409_v57 = vld [vmem:[%s3609_s1 + $0x4c0] ss:$8 sps:$4 sm:$0xff]   ;;  %v2424_v3 = vld [vmem:[%s3609_s1 + $0x4f4] ss:$8 sps:$4 sm:$0xff]  }
  0x15   :  { %1840 = vmatprep.subr.bf16.mxu0 %v2364_v21  ;;  %v18_v53 = vld [vmem:[%s3610_s0 + $0x20] sm:$0xff]  ;;  %1690 = vmatprep.mubr.bf16.mxu1 %v2025_v52  ;;  %v2426_v4 = vld [vmem:[%s3609_s1 + $0xf0] ss:$8 sps:$4 sm:$0xff]   ;;  %v2436_v12 = vld [vmem:[%s3609_s1 + $0x114] ss:$8 sps:$4 sm:$0xff]  }
  0x16   :  { %v26_v54 = vld [vmem:[%s3610_s0 + $0x60] sm:$0xff]  ;;  %v2427_v5 = vld [vmem:[%s3609_s1 + $0x4f0] ss:$8 sps:$4 sm:$0xff]   ;;  %v2439_v13 = vld [vmem:[%s3609_s1 + $0x514] ss:$8 sps:$4 sm:$0xff]  }
  0x17   :  { %1669 = vmatpush1.bf16.msra.mxu1 %v2366_v22  ;;  %v2033_v55 = vcombine.high %v18_v53, %v26_v54  ;;  %v2416_v62 = vld [vmem:[%s3609_s1 + $0xe4] ss:$8 sps:$4 sm:$0xff]   ;;  %v2420_v0 = vld [vmem:[%s3609_s1 + $0xe0] ss:$8 sps:$4 sm:$0xff]   ;;  %v2032_v10 = vcombine.low %v18_v53, %v26_v54  ;;  %v2434_v14 = vld [vmem:[%s3609_s1 + $0x110] ss:$8 sps:$4 sm:$0xff]  }
  0x18   :  { %1841 = vmatpush1.bf16.msra.mxu0 %v2367_v23  ;;  %1670 = vmatprep.subr.bf16.mxu1 %v2368_v24  ;;  %v2418_v63 = vld [vmem:[%s3609_s1 + $0x4e4] ss:$8 sps:$4 sm:$0xff]   ;;  %v2421_v1 = vld [vmem:[%s3609_s1 + $0x4e0] ss:$8 sps:$4 sm:$0xff]   ;;  %v2437_v15 = vld [vmem:[%s3609_s1 + $0x510] ss:$8 sps:$4 sm:$0xff]  }
  0x19   :  { %1842 = vmatprep.subr.bf16.mxu0 %v2370_v25  ;;  %1862 = vmatprep.mubr.bf16.mxu0 %v2033_v55  ;;  %v2430_v6 = vld [vmem:[%s3609_s1 + $0x104] ss:$8 sps:$4 sm:$0xff]   ;;  %v2428_v9 = vld [vmem:[%s3609_s1 + $0x100] ss:$8 sps:$4 sm:$0xff]   ;;  %v2448_v20 = vld [vmem:[%s3609_s1 + $0x134] ss:$8 sps:$4 sm:$0xff]  }
  0x1a   :  { %v2433_v7 = vld [vmem:[%s3609_s1 + $0x504] ss:$8 sps:$4 sm:$0xff]   ;;  %v2431_v11 = vld [vmem:[%s3609_s1 + $0x500] ss:$8 sps:$4 sm:$0xff]   ;;  %v2451_v21 = vld [vmem:[%s3609_s1 + $0x534] ss:$8 sps:$4 sm:$0xff]  }
  0x1b   :  { %1671 = vmatpush1.bf16.msra.mxu1 %v2372_v26  ;;  %v2442_v16 = vld [vmem:[%s3609_s1 + $0x124] ss:$8 sps:$4 sm:$0xff]   ;;  %v2440_v18 = vld [vmem:[%s3609_s1 + $0x120] ss:$8 sps:$4 sm:$0xff]   ;;  %v2446_v22 = vld [vmem:[%s3609_s1 + $0x130] ss:$8 sps:$4 sm:$0xff]  }
  0x1c   :  { %1843 = vmatpush1.bf16.msra.mxu0 %v2373_v27  ;;  %1672 = vmatprep.subr.bf16.mxu1 %v2374_v28  ;;  %v2445_v17 = vld [vmem:[%s3609_s1 + $0x524] ss:$8 sps:$4 sm:$0xff]   ;;  %v2443_v19 = vld [vmem:[%s3609_s1 + $0x520] ss:$8 sps:$4 sm:$0xff]   ;;  %v2449_v23 = vld [vmem:[%s3609_s1 + $0x530] ss:$8 sps:$4 sm:$0xff]  }
  0x1d   :  { %1844 = vmatprep.subr.bf16.mxu0 %v2376_v29  ;;  %v2454_v24 = vld [vmem:[%s3609_s1 + $0x144] ss:$8 sps:$4 sm:$0xff]   ;;  %v2452_v26 = vld [vmem:[%s3609_s1 + $0x140] ss:$8 sps:$4 sm:$0xff]   ;;  %v2460_v28 = vld [vmem:[%s3609_s1 + $0x154] ss:$8 sps:$4 sm:$0xff]  }
  0x1e   :  { %v2457_v25 = vld [vmem:[%s3609_s1 + $0x544] ss:$8 sps:$4 sm:$0xff]   ;;  %v2455_v27 = vld [vmem:[%s3609_s1 + $0x540] ss:$8 sps:$4 sm:$0xff]   ;;  %v2463_v29 = vld [vmem:[%s3609_s1 + $0x554] ss:$8 sps:$4 sm:$0xff]  }
  0x1f   :  { %1673 = vmatpush1.bf16.msra.mxu1 %v2378_v30  ;;  %v2458_v30 = vld [vmem:[%s3609_s1 + $0x150] ss:$8 sps:$4 sm:$0xff]   ;;  %v2476_v48 = vld [vmem:[%s3609_s1 + $0x180] ss:$8 sps:$4 sm:$0xff]   ;;  %v2490_v54 = vld [vmem:[%s3609_s1 + $0x1a4] ss:$8 sps:$4 sm:$0xff]  }
  0x20   :  { %1845 = vmatpush1.bf16.msra.mxu0 %v2379_v31  ;;  %1674 = vmatprep.subr.bf16.mxu1 %v2380_v32  ;;  %v2461_v31 = vld [vmem:[%s3609_s1 + $0x550] ss:$8 sps:$4 sm:$0xff]   ;;  %v2466_v32 = vld [vmem:[%s3609_s1 + $0x164] ss:$8 sps:$4 sm:$0xff]   ;;  %v2479_v49 = vld [vmem:[%s3609_s1 + $0x580] ss:$8 sps:$4 sm:$0xff]  }
  0x21   :  { %1846 = vmatprep.subr.bf16.mxu0 %v2382_v33  ;;  %v2469_v33 = vld [vmem:[%s3609_s1 + $0x564] ss:$8 sps:$4 sm:$0xff]   ;;  %v2482_v52 = vld [vmem:[%s3609_s1 + $0x190] ss:$8 sps:$4 sm:$0xff]  }
  0x22   :  { %v2485_v53 = vld [vmem:[%s3609_s1 + $0x590] ss:$8 sps:$4 sm:$0xff]   ;;  %v2493_v55 = vld [vmem:[%s3609_s1 + $0x5a4] ss:$8 sps:$4 sm:$0xff]  }
  0x23   :  { %1675 = vmatpush1.bf16.msra.mxu1 %v2384_v34  ;;  %v2464_v34 = vld [vmem:[%s3609_s1 + $0x160] ss:$8 sps:$4 sm:$0xff]  }
  0x24   :  { %1847 = vmatpush1.bf16.msra.mxu0 %v2385_v35  ;;  %1676 = vmatprep.subr.bf16.mxu1 %v2386_v36  ;;  %v2467_v35 = vld [vmem:[%s3609_s1 + $0x560] ss:$8 sps:$4 sm:$0xff]  }
  0x25   :  { %1848 = vmatprep.subr.bf16.mxu0 %v2388_v37  ;;  %v3027_v36 = vld [vmem:[%s3610_s0 + $0x8] sm:$0xff] }
  0x26   :  { %v3032_v37 = vld [vmem:[%s3610_s0 + $0x48] sm:$0xff] }
  0x27   :  { %1677 = vmatpush1.bf16.msra.mxu1 %v2390_v38  ;;  %v2472_v38 = vld [vmem:[%s3609_s1 + $0x174] ss:$8 sps:$4 sm:$0xff]  }
  0x28   :  { %1849 = vmatpush1.bf16.msra.mxu0 %v2391_v39  ;;  %1678 = vmatprep.subr.bf16.mxu1 %v2392_v40  ;;  %v2475_v39 = vld [vmem:[%s3609_s1 + $0x574] ss:$8 sps:$4 sm:$0xff]   ;;  %v2027_v40 = vcombine.high %v3027_v36, %v3032_v37 }
  0x29   :  { %1850 = vmatprep.subr.bf16.mxu0 %v2394_v41  ;;  %v3045_v41 = vld [vmem:[%s3610_s0 + $0x28] sm:$0xff] }
  0x2b   :  { %1679 = vmatpush1.bf16.msra.mxu1 %v2396_v42  ;;  %v3050_v42 = vld [vmem:[%s3610_s0 + $0x68] sm:$0xff] }
  0x2c   :  { %1851 = vmatpush1.bf16.msra.mxu0 %v2397_v43  ;;  %1680 = vmatprep.subr.bf16.mxu1 %v2398_v44  ;;  %v2035_v43 = vcombine.high %v3045_v41, %v3050_v42  ;;  %v2470_v44 = vld [vmem:[%s3609_s1 + $0x170] ss:$8 sps:$4 sm:$0xff]  }
  0x2d   :  { %1852 = vmatprep.subr.bf16.mxu0 %v2400_v45  ;;  %v2473_v45 = vld [vmem:[%s3609_s1 + $0x570] ss:$8 sps:$4 sm:$0xff]  }
  0x2f   :  { %1681 = vmatpush1.bf16.msra.mxu1 %v2402_v46  ;;  %v2478_v46 = vld [vmem:[%s3609_s1 + $0x184] ss:$8 sps:$4 sm:$0xff]  }
  0x30   :  { %1853 = vmatpush1.bf16.msra.mxu0 %v2403_v47  ;;  %1682 = vmatprep.subr.bf16.mxu1 %v2404_v50  ;;  %v2481_v47 = vld [vmem:[%s3609_s1 + $0x584] ss:$8 sps:$4 sm:$0xff]   ;;  %v2484_v50 = vld [vmem:[%s3609_s1 + $0x194] ss:$8 sps:$4 sm:$0xff]  }
  0x31   :  { %1854 = vmatprep.subr.bf16.mxu0 %v2406_v51  ;;  %v2487_v51 = vld [vmem:[%s3609_s1 + $0x594] ss:$8 sps:$4 sm:$0xff]  }
  0x33   :  { %1683 = vmatpush1.bf16.msra.mxu1 %v2408_v56  ;;  %v2488_v56 = vld [vmem:[%s3609_s1 + $0x1a0] ss:$8 sps:$4 sm:$0xff]  }
  0x34   :  { %1855 = vmatpush1.bf16.msra.mxu0 %v2409_v57  ;;  %1684 = vmatprep.subr.bf16.mxu1 %v2410_v58  ;;  %v2491_v57 = vld [vmem:[%s3609_s1 + $0x5a0] ss:$8 sps:$4 sm:$0xff]   ;;  %v2496_v58 = vld [vmem:[%s3609_s1 + $0x1b4] ss:$8 sps:$4 sm:$0xff]  }
  0x35   :  { %1856 = vmatprep.subr.bf16.mxu0 %v2412_v59  ;;  %v2499_v59 = vld [vmem:[%s3609_s1 + $0x5b4] ss:$8 sps:$4 sm:$0xff]  }
  0x37   :  { %1685 = vmatpush1.bf16.msra.mxu1 %v2414_v60  ;;  %v2494_v60 = vld [vmem:[%s3609_s1 + $0x1b0] ss:$8 sps:$4 sm:$0xff]  }
  0x38   :  { %1857 = vmatpush1.bf16.msra.mxu0 %v2415_v61  ;;  %1686 = vmatprep.subr.bf16.mxu1 %v2416_v62  ;;  %v2497_v61 = vld [vmem:[%s3609_s1 + $0x5b0] ss:$8 sps:$4 sm:$0xff]   ;;  %v2502_v62 = vld [vmem:[%s3609_s1 + $0x1c4] ss:$8 sps:$4 sm:$0xff]  }
  0x39   :  { %1858 = vmatprep.subr.bf16.mxu0 %v2418_v63  ;;  %v2505_v63 = vld [vmem:[%s3609_s1 + $0x5c4] ss:$8 sps:$4 sm:$0xff]  }
  0x3b   :  { %1687 = vmatpush1.bf16.msra.mxu1 %v2420_v0  ;;  %v2500_v0 = vld [vmem:[%s3609_s1 + $0x1c0] ss:$8 sps:$4 sm:$0xff]  }
  0x3c   :  { %1859 = vmatpush1.bf16.msra.mxu0 %v2421_v1  ;;  %1688 = vmatprep.subr.bf16.mxu1 %v2422_v2  ;;  %v2503_v1 = vld [vmem:[%s3609_s1 + $0x5c0] ss:$8 sps:$4 sm:$0xff]   ;;  %v2508_v2 = vld [vmem:[%s3609_s1 + $0x1d4] ss:$8 sps:$4 sm:$0xff]  }
  0x3d   :  { %1860 = vmatprep.subr.bf16.mxu0 %v2424_v3  ;;  %v2511_v3 = vld [vmem:[%s3609_s1 + $0x5d4] ss:$8 sps:$4 sm:$0xff]  }
  0x3f   :  { %1689 = vmatpush1.bf16.msra.mxu1 %v2426_v4  ;;  %v2506_v4 = vld [vmem:[%s3609_s1 + $0x1d0] ss:$8 sps:$4 sm:$0xff]  }
  0x40   :  { %1861 = vmatpush1.bf16.msra.mxu0 %v2427_v5  ;;  %1701 = vmatprep.subr.bf16.mxu1 %v2430_v6  ;;  %v2509_v5 = vld [vmem:[%s3609_s1 + $0x5d0] ss:$8 sps:$4 sm:$0xff]   ;;  %v2514_v6 = vld [vmem:[%s3609_s1 + $0x1e4] ss:$8 sps:$4 sm:$0xff]  }
  0x41   :  { %1873 = vmatprep.subr.bf16.mxu0 %v2433_v7  ;;  %v2517_v7 = vld [vmem:[%s3609_s1 + $0x5e4] ss:$8 sps:$4 sm:$0xff]  }
  0x42   :  { %1691 = vmatmul.mubr.bf16.vlgmr.msra.gmra.mrb[0].mxu1 %v2024_v8  ;;  %v2512_v8 = vld [vmem:[%s3609_s1 + $0x1e0] ss:$8 sps:$4 sm:$0xff]  }
  0x43   :  { %1863 = vmatmul.mubr.bf16.vlgmr.msra.gmra.mrb[0].mxu0 %v2032_v10  ;;  %1702 = vmatpush1.bf16.msra.mxu1 %v2428_v9  ;;  %v2515_v9 = vld [vmem:[%s3609_s1 + $0x5e0] ss:$8 sps:$4 sm:$0xff]   ;;  %v2520_v10 = vld [vmem:[%s3609_s1 + $0x1f4] ss:$8 sps:$4 sm:$0xff]  }
  0x44   :  { %1874 = vmatpush1.bf16.msra.mxu0 %v2431_v11  ;;  %1703 = vmatprep.subr.bf16.mxu1 %v2436_v12  ;;  %v2523_v11 = vld [vmem:[%s3609_s1 + $0x5f4] ss:$8 sps:$4 sm:$0xff]   ;;  %v2518_v12 = vld [vmem:[%s3609_s1 + $0x1f0] ss:$8 sps:$4 sm:$0xff]  }
  0x45   :  { %1875 = vmatprep.subr.bf16.mxu0 %v2439_v13  ;;  %1733 = vmatprep.mubr.bf16.mxu1 %v2027_v40  ;;  %v2521_v13 = vld [vmem:[%s3609_s1 + $0x5f0] ss:$8 sps:$4 sm:$0xff]   ;;  %v2548_v40 = vld [vmem:[%s3609_s1 + $0x240] ss:$8 sps:$4 sm:$0xff]  }
  0x46   :  { %1905 = vmatprep.mubr.bf16.mxu0 %v2035_v43  ;;  %v2559_v43 = vld [vmem:[%s3609_s1 + $0x654] ss:$8 sps:$4 sm:$0xff]  }
  0x47   :  { %1704 = vmatpush1.bf16.msra.mxu1 %v2434_v14  ;;  %v2526_v14 = vld [vmem:[%s3609_s1 + $0x204] ss:$8 sps:$4 sm:$0xff]  }
  0x48   :  { %1876 = vmatpush1.bf16.msra.mxu0 %v2437_v15  ;;  %1705 = vmatprep.subr.bf16.mxu1 %v2442_v16  ;;  %v2529_v15 = vld [vmem:[%s3609_s1 + $0x604] ss:$8 sps:$4 sm:$0xff]   ;;  %v2026_v16 = vcombine.low %v3027_v36, %v3032_v37  ;;  %v2542_v36 = vld [vmem:[%s3609_s1 + $0x230] ss:$8 sps:$4 sm:$0xff]  }
  0x49   :  { %1877 = vmatprep.subr.bf16.mxu0 %v2445_v17  ;;  %v2524_v17 = vld [vmem:[%s3609_s1 + $0x200] ss:$8 sps:$4 sm:$0xff]   ;;  %v2545_v37 = vld [vmem:[%s3609_s1 + $0x630] ss:$8 sps:$4 sm:$0xff]  }
  0x4b   :  { %1706 = vmatpush1.bf16.msra.mxu1 %v2440_v18  ;;  %v2034_v18 = vcombine.low %v3045_v41, %v3050_v42  ;;  %v2551_v41 = vld [vmem:[%s3609_s1 + $0x640] ss:$8 sps:$4 sm:$0xff]   ;;  %v2556_v42 = vld [vmem:[%s3609_s1 + $0x254] ss:$8 sps:$4 sm:$0xff]  }
  0x4c   :  { %1878 = vmatpush1.bf16.msra.mxu0 %v2443_v19  ;;  %1707 = vmatprep.subr.bf16.mxu1 %v2448_v20  ;;  %v2527_v19 = vld [vmem:[%s3609_s1 + $0x600] ss:$8 sps:$4 sm:$0xff]   ;;  %v2532_v20 = vld [vmem:[%s3609_s1 + $0x214] ss:$8 sps:$4 sm:$0xff]  }
  0x4d   :  { %1879 = vmatprep.subr.bf16.mxu0 %v2451_v21  ;;  %v2535_v21 = vld [vmem:[%s3609_s1 + $0x614] ss:$8 sps:$4 sm:$0xff]  }
  0x4f   :  { %1708 = vmatpush1.bf16.msra.mxu1 %v2446_v22  ;;  %v2530_v22 = vld [vmem:[%s3609_s1 + $0x210] ss:$8 sps:$4 sm:$0xff]  }
  0x50   :  { %1880 = vmatpush1.bf16.msra.mxu0 %v2449_v23  ;;  %1709 = vmatprep.subr.bf16.mxu1 %v2454_v24  ;;  %v2533_v23 = vld [vmem:[%s3609_s1 + $0x610] ss:$8 sps:$4 sm:$0xff]  }
  0x51   :  { %1881 = vmatprep.subr.bf16.mxu0 %v2457_v25  ;;  %v3187_v24 = vld [vmem:[%s3610_s0 + $0x10] sm:$0xff] }
  0x52   :  { %v3192_v25 = vld [vmem:[%s3610_s0 + $0x50] sm:$0xff] }
  0x53   :  { %1710 = vmatpush1.bf16.msra.mxu1 %v2452_v26  ;;  %v2538_v26 = vld [vmem:[%s3609_s1 + $0x224] ss:$8 sps:$4 sm:$0xff]  }
  0x54   :  { %1882 = vmatpush1.bf16.msra.mxu0 %v2455_v27  ;;  %1711 = vmatprep.subr.bf16.mxu1 %v2460_v28  ;;  %v2541_v27 = vld [vmem:[%s3609_s1 + $0x624] ss:$8 sps:$4 sm:$0xff]   ;;  %v2029_v28 = vcombine.high %v3187_v24, %v3192_v25 }
  0x55   :  { %1883 = vmatprep.subr.bf16.mxu0 %v2463_v29  ;;  %v3205_v29 = vld [vmem:[%s3610_s0 + $0x30] sm:$0xff] }
  0x57   :  { %1712 = vmatpush1.bf16.msra.mxu1 %v2458_v30  ;;  %v3210_v30 = vld [vmem:[%s3610_s0 + $0x70] sm:$0xff] }
  0x58   :  { %1884 = vmatpush1.bf16.msra.mxu0 %v2461_v31  ;;  %1713 = vmatprep.subr.bf16.mxu1 %v2466_v32  ;;  %v2037_v31 = vcombine.high %v3205_v29, %v3210_v30  ;;  %v2536_v32 = vld [vmem:[%s3609_s1 + $0x220] ss:$8 sps:$4 sm:$0xff]  }
  0x59   :  { %1885 = vmatprep.subr.bf16.mxu0 %v2469_v33  ;;  %v2539_v33 = vld [vmem:[%s3609_s1 + $0x620] ss:$8 sps:$4 sm:$0xff]  }
  0x5b   :  { %1714 = vmatpush1.bf16.msra.mxu1 %v2464_v34  ;;  %v2544_v34 = vld [vmem:[%s3609_s1 + $0x234] ss:$8 sps:$4 sm:$0xff]  }
  0x5c   :  { %1886 = vmatpush1.bf16.msra.mxu0 %v2467_v35  ;;  %1715 = vmatprep.subr.bf16.mxu1 %v2472_v38  ;;  %v2547_v35 = vld [vmem:[%s3609_s1 + $0x634] ss:$8 sps:$4 sm:$0xff]   ;;  %v2550_v38 = vld [vmem:[%s3609_s1 + $0x244] ss:$8 sps:$4 sm:$0xff]  }
  0x5d   :  { %1887 = vmatprep.subr.bf16.mxu0 %v2475_v39  ;;  %v2553_v39 = vld [vmem:[%s3609_s1 + $0x644] ss:$8 sps:$4 sm:$0xff]  }
  0x5f   :  { %1716 = vmatpush1.bf16.msra.mxu1 %v2470_v44  ;;  %v2554_v44 = vld [vmem:[%s3609_s1 + $0x250] ss:$8 sps:$4 sm:$0xff]  }
  0x60   :  { %1888 = vmatpush1.bf16.msra.mxu0 %v2473_v45  ;;  %1717 = vmatprep.subr.bf16.mxu1 %v2478_v46  ;;  %v2557_v45 = vld [vmem:[%s3609_s1 + $0x650] ss:$8 sps:$4 sm:$0xff]   ;;  %v2562_v46 = vld [vmem:[%s3609_s1 + $0x264] ss:$8 sps:$4 sm:$0xff]  }
  0x61   :  { %1889 = vmatprep.subr.bf16.mxu0 %v2481_v47  ;;  %v2565_v47 = vld [vmem:[%s3609_s1 + $0x664] ss:$8 sps:$4 sm:$0xff]  }
  0x63   :  { %1718 = vmatpush1.bf16.msra.mxu1 %v2476_v48  ;;  %v2560_v48 = vld [vmem:[%s3609_s1 + $0x260] ss:$8 sps:$4 sm:$0xff]  }
  0x64   :  { %1890 = vmatpush1.bf16.msra.mxu0 %v2479_v49  ;;  %1719 = vmatprep.subr.bf16.mxu1 %v2484_v50  ;;  %v2563_v49 = vld [vmem:[%s3609_s1 + $0x660] ss:$8 sps:$4 sm:$0xff]   ;;  %v2568_v50 = vld [vmem:[%s3609_s1 + $0x274] ss:$8 sps:$4 sm:$0xff]  }
  0x65   :  { %1891 = vmatprep.subr.bf16.mxu0 %v2487_v51  ;;  %v2571_v51 = vld [vmem:[%s3609_s1 + $0x674] ss:$8 sps:$4 sm:$0xff]  }
  0x67   :  { %1720 = vmatpush1.bf16.msra.mxu1 %v2482_v52  ;;  %v2566_v52 = vld [vmem:[%s3609_s1 + $0x270] ss:$8 sps:$4 sm:$0xff]  }
  0x68   :  { %1892 = vmatpush1.bf16.msra.mxu0 %v2485_v53  ;;  %1721 = vmatprep.subr.bf16.mxu1 %v2490_v54  ;;  %v2569_v53 = vld [vmem:[%s3609_s1 + $0x670] ss:$8 sps:$4 sm:$0xff]   ;;  %v2574_v54 = vld [vmem:[%s3609_s1 + $0x284] ss:$8 sps:$4 sm:$0xff]  }
  0x69   :  { %1893 = vmatprep.subr.bf16.mxu0 %v2493_v55  ;;  %v2577_v55 = vld [vmem:[%s3609_s1 + $0x684] ss:$8 sps:$4 sm:$0xff]  }
  0x6b   :  { %1722 = vmatpush1.bf16.msra.mxu1 %v2488_v56  ;;  %v2572_v56 = vld [vmem:[%s3609_s1 + $0x280] ss:$8 sps:$4 sm:$0xff]  }
  0x6c   :  { %1894 = vmatpush1.bf16.msra.mxu0 %v2491_v57  ;;  %1723 = vmatprep.subr.bf16.mxu1 %v2496_v58  ;;  %v2575_v57 = vld [vmem:[%s3609_s1 + $0x680] ss:$8 sps:$4 sm:$0xff]   ;;  %v2580_v58 = vld [vmem:[%s3609_s1 + $0x294] ss:$8 sps:$4 sm:$0xff]  }
  0x6d   :  { %1895 = vmatprep.subr.bf16.mxu0 %v2499_v59  ;;  %v2583_v59 = vld [vmem:[%s3609_s1 + $0x694] ss:$8 sps:$4 sm:$0xff]  }
  0x6f   :  { %1724 = vmatpush1.bf16.msra.mxu1 %v2494_v60  ;;  %v2578_v60 = vld [vmem:[%s3609_s1 + $0x290] ss:$8 sps:$4 sm:$0xff]  }
  0x70   :  { %1896 = vmatpush1.bf16.msra.mxu0 %v2497_v61  ;;  %1725 = vmatprep.subr.bf16.mxu1 %v2502_v62  ;;  %v2581_v61 = vld [vmem:[%s3609_s1 + $0x690] ss:$8 sps:$4 sm:$0xff]   ;;  %v2586_v62 = vld [vmem:[%s3609_s1 + $0x2a4] ss:$8 sps:$4 sm:$0xff]  }
  0x71   :  { %1897 = vmatprep.subr.bf16.mxu0 %v2505_v63  ;;  %v2589_v63 = vld [vmem:[%s3609_s1 + $0x6a4] ss:$8 sps:$4 sm:$0xff]  }
  0x73   :  { %1726 = vmatpush1.bf16.msra.mxu1 %v2500_v0  ;;  %v2584_v0 = vld [vmem:[%s3609_s1 + $0x2a0] ss:$8 sps:$4 sm:$0xff]  }
  0x74   :  { %1898 = vmatpush1.bf16.msra.mxu0 %v2503_v1  ;;  %1727 = vmatprep.subr.bf16.mxu1 %v2508_v2  ;;  %v2587_v1 = vld [vmem:[%s3609_s1 + $0x6a0] ss:$8 sps:$4 sm:$0xff]   ;;  %v2592_v2 = vld [vmem:[%s3609_s1 + $0x2b4] ss:$8 sps:$4 sm:$0xff]  }
  0x75   :  { %1899 = vmatprep.subr.bf16.mxu0 %v2511_v3  ;;  %v2595_v3 = vld [vmem:[%s3609_s1 + $0x6b4] ss:$8 sps:$4 sm:$0xff]  }
  0x77   :  { %1728 = vmatpush1.bf16.msra.mxu1 %v2506_v4  ;;  %v2590_v4 = vld [vmem:[%s3609_s1 + $0x2b0] ss:$8 sps:$4 sm:$0xff]  }
  0x78   :  { %1900 = vmatpush1.bf16.msra.mxu0 %v2509_v5  ;;  %1729 = vmatprep.subr.bf16.mxu1 %v2514_v6  ;;  %v2593_v5 = vld [vmem:[%s3609_s1 + $0x6b0] ss:$8 sps:$4 sm:$0xff]   ;;  %v2598_v6 = vld [vmem:[%s3609_s1 + $0x2c4] ss:$8 sps:$4 sm:$0xff]  }
  0x79   :  { %1901 = vmatprep.subr.bf16.mxu0 %v2517_v7  ;;  %v2601_v7 = vld [vmem:[%s3609_s1 + $0x6c4] ss:$8 sps:$4 sm:$0xff]  }
  0x7b   :  { %1730 = vmatpush1.bf16.msra.mxu1 %v2512_v8  ;;  %v2596_v8 = vld [vmem:[%s3609_s1 + $0x2c0] ss:$8 sps:$4 sm:$0xff]  }
  0x7c   :  { %1902 = vmatpush1.bf16.msra.mxu0 %v2515_v9  ;;  %1731 = vmatprep.subr.bf16.mxu1 %v2520_v10  ;;  %v2599_v9 = vld [vmem:[%s3609_s1 + $0x6c0] ss:$8 sps:$4 sm:$0xff]   ;;  %v2604_v10 = vld [vmem:[%s3609_s1 + $0x2d4] ss:$8 sps:$4 sm:$0xff]  }
  0x7d   :  { %1903 = vmatprep.subr.bf16.mxu0 %v2523_v11  ;;  %v2607_v11 = vld [vmem:[%s3609_s1 + $0x6d4] ss:$8 sps:$4 sm:$0xff]  }
  0x7f   :  { %1732 = vmatpush1.bf16.msra.mxu1 %v2518_v12  ;;  %v2602_v12 = vld [vmem:[%s3609_s1 + $0x2d0] ss:$8 sps:$4 sm:$0xff]  }
  0x80   :  { %1904 = vmatpush1.bf16.msra.mxu0 %v2521_v13  ;;  %1744 = vmatprep.subr.bf16.mxu1 %v2526_v14  ;;  %v2605_v13 = vld [vmem:[%s3609_s1 + $0x6d0] ss:$8 sps:$4 sm:$0xff]   ;;  %v2610_v14 = vld [vmem:[%s3609_s1 + $0x2e4] ss:$8 sps:$4 sm:$0xff]  }
  0x81   :  { %1916 = vmatprep.subr.bf16.mxu0 %v2529_v15  ;;  %v2613_v15 = vld [vmem:[%s3609_s1 + $0x6e4] ss:$8 sps:$4 sm:$0xff]  }
  0x82   :  { %1734 = vmatmul.mubr.bf16.vlgmr.msra.gmra.mrb[0].mxu1 %v2026_v16  ;;  %v2608_v16 = vld [vmem:[%s3609_s1 + $0x2e0] ss:$8 sps:$4 sm:$0xff]  }
  0x83   :  { %1906 = vmatmul.mubr.bf16.vlgmr.msra.gmra.mrb[0].mxu0 %v2034_v18  ;;  %1745 = vmatpush1.bf16.msra.mxu1 %v2524_v17  ;;  %v2611_v17 = vld [vmem:[%s3609_s1 + $0x6e0] ss:$8 sps:$4 sm:$0xff]   ;;  %v2616_v18 = vld [vmem:[%s3609_s1 + $0x2f4] ss:$8 sps:$4 sm:$0xff]  }
  0x84   :  { %1917 = vmatpush1.bf16.msra.mxu0 %v2527_v19  ;;  %1746 = vmatprep.subr.bf16.mxu1 %v2532_v20  ;;  %v2619_v19 = vld [vmem:[%s3609_s1 + $0x6f4] ss:$8 sps:$4 sm:$0xff]   ;;  %v2614_v20 = vld [vmem:[%s3609_s1 + $0x2f0] ss:$8 sps:$4 sm:$0xff]  }
  0x85   :  { %1918 = vmatprep.subr.bf16.mxu0 %v2535_v21  ;;  %1776 = vmatprep.mubr.bf16.mxu1 %v2029_v28  ;;  %v2617_v21 = vld [vmem:[%s3609_s1 + $0x6f0] ss:$8 sps:$4 sm:$0xff]   ;;  %v2036_v28 = vcombine.low %v3205_v29, %v3210_v30  ;;  %v2628_v29 = vld [vmem:[%s3609_s1 + $0x314] ss:$8 sps:$4 sm:$0xff]  }
  0x86   :  { %1948 = vmatprep.mubr.bf16.mxu0 %v2037_v31  ;;  %v3394_v31 = vld [vmem:[%s3610_s0 + $0x58] sm:$0xff] }
  0x87   :  { %1747 = vmatpush1.bf16.msra.mxu1 %v2530_v22  ;;  %v2622_v22 = vld [vmem:[%s3609_s1 + $0x304] ss:$8 sps:$4 sm:$0xff]   ;;  %v2631_v30 = vld [vmem:[%s3609_s1 + $0x714] ss:$8 sps:$4 sm:$0xff]  }
  0x88   :  { %1919 = vmatpush1.bf16.msra.mxu0 %v2533_v23  ;;  %1748 = vmatprep.subr.bf16.mxu1 %v2538_v26  ;;  %v2625_v23 = vld [vmem:[%s3609_s1 + $0x704] ss:$8 sps:$4 sm:$0xff]   ;;  %v3385_v26 = vld [vmem:[%s3610_s0 + $0x18] sm:$0xff] }
  0x89   :  { %1920 = vmatprep.subr.bf16.mxu0 %v2541_v27  ;;  %v2028_v27 = vcombine.low %v3187_v24, %v3192_v25  ;;  %v2620_v24 = vld [vmem:[%s3609_s1 + $0x300] ss:$8 sps:$4 sm:$0xff]  }
  0x8a   :  { %v2623_v25 = vld [vmem:[%s3609_s1 + $0x700] ss:$8 sps:$4 sm:$0xff]  }
  0x8b   :  { %1749 = vmatpush1.bf16.msra.mxu1 %v2536_v32  ;;  %v3399_v32 = vld [vmem:[%s3610_s0 + $0x38] sm:$0xff] }
  0x8c   :  { %1921 = vmatpush1.bf16.msra.mxu0 %v2539_v33  ;;  %1750 = vmatprep.subr.bf16.mxu1 %v2544_v34  ;;  %v3404_v33 = vld [vmem:[%s3610_s0 + $0x78] sm:$0xff]  ;;  %v2031_v34 = vcombine.high %v3385_v26, %v3394_v31 }
  0x8d   :  { %1922 = vmatprep.subr.bf16.mxu0 %v2547_v35  ;;  %v2039_v35 = vcombine.high %v3399_v32, %v3404_v33 }
  0x8f   :  { %1751 = vmatpush1.bf16.msra.mxu1 %v2542_v36  ;;  %v2626_v36 = vld [vmem:[%s3609_s1 + $0x310] ss:$8 sps:$4 sm:$0xff]  }
  0x90   :  { %1923 = vmatpush1.bf16.msra.mxu0 %v2545_v37  ;;  %1752 = vmatprep.subr.bf16.mxu1 %v2550_v38  ;;  %v2629_v37 = vld [vmem:[%s3609_s1 + $0x710] ss:$8 sps:$4 sm:$0xff]   ;;  %v2634_v38 = vld [vmem:[%s3609_s1 + $0x324] ss:$8 sps:$4 sm:$0xff]  }
  0x91   :  { %1924 = vmatprep.subr.bf16.mxu0 %v2553_v39  ;;  %v2637_v39 = vld [vmem:[%s3609_s1 + $0x724] ss:$8 sps:$4 sm:$0xff]  }
  0x93   :  { %1753 = vmatpush1.bf16.msra.mxu1 %v2548_v40  ;;  %v2632_v40 = vld [vmem:[%s3609_s1 + $0x320] ss:$8 sps:$4 sm:$0xff]  }
  0x94   :  { %1925 = vmatpush1.bf16.msra.mxu0 %v2551_v41  ;;  %1754 = vmatprep.subr.bf16.mxu1 %v2556_v42  ;;  %v2635_v41 = vld [vmem:[%s3609_s1 + $0x720] ss:$8 sps:$4 sm:$0xff]   ;;  %v2640_v42 = vld [vmem:[%s3609_s1 + $0x334] ss:$8 sps:$4 sm:$0xff]  }
  0x95   :  { %1926 = vmatprep.subr.bf16.mxu0 %v2559_v43  ;;  %v2643_v43 = vld [vmem:[%s3609_s1 + $0x734] ss:$8 sps:$4 sm:$0xff]  }
  0x97   :  { %1755 = vmatpush1.bf16.msra.mxu1 %v2554_v44  ;;  %v2638_v44 = vld [vmem:[%s3609_s1 + $0x330] ss:$8 sps:$4 sm:$0xff]  }
  0x98   :  { %1927 = vmatpush1.bf16.msra.mxu0 %v2557_v45  ;;  %1756 = vmatprep.subr.bf16.mxu1 %v2562_v46  ;;  %v2641_v45 = vld [vmem:[%s3609_s1 + $0x730] ss:$8 sps:$4 sm:$0xff]   ;;  %v2646_v46 = vld [vmem:[%s3609_s1 + $0x344] ss:$8 sps:$4 sm:$0xff]  }
  0x99   :  { %1928 = vmatprep.subr.bf16.mxu0 %v2565_v47  ;;  %v2649_v47 = vld [vmem:[%s3609_s1 + $0x744] ss:$8 sps:$4 sm:$0xff]  }
  0x9b   :  { %1757 = vmatpush1.bf16.msra.mxu1 %v2560_v48  ;;  %v2644_v48 = vld [vmem:[%s3609_s1 + $0x340] ss:$8 sps:$4 sm:$0xff]  }
  0x9c   :  { %1929 = vmatpush1.bf16.msra.mxu0 %v2563_v49  ;;  %1758 = vmatprep.subr.bf16.mxu1 %v2568_v50  ;;  %v2647_v49 = vld [vmem:[%s3609_s1 + $0x740] ss:$8 sps:$4 sm:$0xff]   ;;  %v2652_v50 = vld [vmem:[%s3609_s1 + $0x354] ss:$8 sps:$4 sm:$0xff]  }
  0x9d   :  { %1930 = vmatprep.subr.bf16.mxu0 %v2571_v51  ;;  %v2655_v51 = vld [vmem:[%s3609_s1 + $0x754] ss:$8 sps:$4 sm:$0xff]  }
  0x9f   :  { %1759 = vmatpush1.bf16.msra.mxu1 %v2566_v52  ;;  %v2650_v52 = vld [vmem:[%s3609_s1 + $0x350] ss:$8 sps:$4 sm:$0xff]  }
  0xa0   :  { %1931 = vmatpush1.bf16.msra.mxu0 %v2569_v53  ;;  %1760 = vmatprep.subr.bf16.mxu1 %v2574_v54  ;;  %v2653_v53 = vld [vmem:[%s3609_s1 + $0x750] ss:$8 sps:$4 sm:$0xff]   ;;  %v2658_v54 = vld [vmem:[%s3609_s1 + $0x364] ss:$8 sps:$4 sm:$0xff]  }
  0xa1   :  { %1932 = vmatprep.subr.bf16.mxu0 %v2577_v55  ;;  %v2661_v55 = vld [vmem:[%s3609_s1 + $0x764] ss:$8 sps:$4 sm:$0xff]  }
  0xa3   :  { %1761 = vmatpush1.bf16.msra.mxu1 %v2572_v56  ;;  %v2656_v56 = vld [vmem:[%s3609_s1 + $0x360] ss:$8 sps:$4 sm:$0xff]  }
  0xa4   :  { %1933 = vmatpush1.bf16.msra.mxu0 %v2575_v57  ;;  %1762 = vmatprep.subr.bf16.mxu1 %v2580_v58  ;;  %v2659_v57 = vld [vmem:[%s3609_s1 + $0x760] ss:$8 sps:$4 sm:$0xff]   ;;  %v2664_v58 = vld [vmem:[%s3609_s1 + $0x374] ss:$8 sps:$4 sm:$0xff]  }
  0xa5   :  { %1934 = vmatprep.subr.bf16.mxu0 %v2583_v59  ;;  %v2667_v59 = vld [vmem:[%s3609_s1 + $0x774] ss:$8 sps:$4 sm:$0xff]  }
  0xa7   :  { %1763 = vmatpush1.bf16.msra.mxu1 %v2578_v60  ;;  %v2662_v60 = vld [vmem:[%s3609_s1 + $0x370] ss:$8 sps:$4 sm:$0xff]  }
  0xa8   :  { %1935 = vmatpush1.bf16.msra.mxu0 %v2581_v61  ;;  %1764 = vmatprep.subr.bf16.mxu1 %v2586_v62  ;;  %v2665_v61 = vld [vmem:[%s3609_s1 + $0x770] ss:$8 sps:$4 sm:$0xff]   ;;  %v2670_v62 = vld [vmem:[%s3609_s1 + $0x384] ss:$8 sps:$4 sm:$0xff]  }
  0xa9   :  { %1936 = vmatprep.subr.bf16.mxu0 %v2589_v63  ;;  %v2673_v63 = vld [vmem:[%s3609_s1 + $0x784] ss:$8 sps:$4 sm:$0xff]  }
  0xab   :  { %1765 = vmatpush1.bf16.msra.mxu1 %v2584_v0  ;;  %v2668_v0 = vld [vmem:[%s3609_s1 + $0x380] ss:$8 sps:$4 sm:$0xff]  }
  0xac   :  { %1937 = vmatpush1.bf16.msra.mxu0 %v2587_v1  ;;  %1766 = vmatprep.subr.bf16.mxu1 %v2592_v2  ;;  %v2671_v1 = vld [vmem:[%s3609_s1 + $0x780] ss:$8 sps:$4 sm:$0xff]   ;;  %v2676_v2 = vld [vmem:[%s3609_s1 + $0x394] ss:$8 sps:$4 sm:$0xff]  }
  0xad   :  { %1938 = vmatprep.subr.bf16.mxu0 %v2595_v3  ;;  %v2679_v3 = vld [vmem:[%s3609_s1 + $0x794] ss:$8 sps:$4 sm:$0xff]  }
  0xaf   :  { %1767 = vmatpush1.bf16.msra.mxu1 %v2590_v4  ;;  %v2674_v4 = vld [vmem:[%s3609_s1 + $0x390] ss:$8 sps:$4 sm:$0xff]  }
  0xb0   :  { %1939 = vmatpush1.bf16.msra.mxu0 %v2593_v5  ;;  %1768 = vmatprep.subr.bf16.mxu1 %v2598_v6  ;;  %v2677_v5 = vld [vmem:[%s3609_s1 + $0x790] ss:$8 sps:$4 sm:$0xff]   ;;  %v2682_v6 = vld [vmem:[%s3609_s1 + $0x3a4] ss:$8 sps:$4 sm:$0xff]  }
  0xb1   :  { %1940 = vmatprep.subr.bf16.mxu0 %v2601_v7  ;;  %v2685_v7 = vld [vmem:[%s3609_s1 + $0x7a4] ss:$8 sps:$4 sm:$0xff]  }
  0xb3   :  { %1769 = vmatpush1.bf16.msra.mxu1 %v2596_v8  ;;  %v2680_v8 = vld [vmem:[%s3609_s1 + $0x3a0] ss:$8 sps:$4 sm:$0xff]  }
  0xb4   :  { %1941 = vmatpush1.bf16.msra.mxu0 %v2599_v9  ;;  %1770 = vmatprep.subr.bf16.mxu1 %v2604_v10  ;;  %v2683_v9 = vld [vmem:[%s3609_s1 + $0x7a0] ss:$8 sps:$4 sm:$0xff]   ;;  %v2688_v10 = vld [vmem:[%s3609_s1 + $0x3b4] ss:$8 sps:$4 sm:$0xff]  }
  0xb5   :  { %1942 = vmatprep.subr.bf16.mxu0 %v2607_v11  ;;  %v2691_v11 = vld [vmem:[%s3609_s1 + $0x7b4] ss:$8 sps:$4 sm:$0xff]  }
  0xb7   :  { %1771 = vmatpush1.bf16.msra.mxu1 %v2602_v12  ;;  %v2686_v12 = vld [vmem:[%s3609_s1 + $0x3b0] ss:$8 sps:$4 sm:$0xff]  }
  0xb8   :  { %1943 = vmatpush1.bf16.msra.mxu0 %v2605_v13  ;;  %1772 = vmatprep.subr.bf16.mxu1 %v2610_v14  ;;  %v2689_v13 = vld [vmem:[%s3609_s1 + $0x7b0] ss:$8 sps:$4 sm:$0xff]   ;;  %v2694_v14 = vld [vmem:[%s3609_s1 + $0x3c4] ss:$8 sps:$4 sm:$0xff]  }
  0xb9   :  { %1944 = vmatprep.subr.bf16.mxu0 %v2613_v15  ;;  %v2697_v15 = vld [vmem:[%s3609_s1 + $0x7c4] ss:$8 sps:$4 sm:$0xff]  }
  0xbb   :  { %1773 = vmatpush1.bf16.msra.mxu1 %v2608_v16  ;;  %v2692_v16 = vld [vmem:[%s3609_s1 + $0x3c0] ss:$8 sps:$4 sm:$0xff]  }
  0xbc   :  { %1945 = vmatpush1.bf16.msra.mxu0 %v2611_v17  ;;  %1774 = vmatprep.subr.bf16.mxu1 %v2616_v18  ;;  %v2695_v17 = vld [vmem:[%s3609_s1 + $0x7c0] ss:$8 sps:$4 sm:$0xff]   ;;  %v2700_v18 = vld [vmem:[%s3609_s1 + $0x3d4] ss:$8 sps:$4 sm:$0xff]  }
  0xbd   :  { %1946 = vmatprep.subr.bf16.mxu0 %v2619_v19  ;;  %v2703_v19 = vld [vmem:[%s3609_s1 + $0x7d4] ss:$8 sps:$4 sm:$0xff]  }
  0xbf   :  { %1775 = vmatpush1.bf16.msra.mxu1 %v2614_v20  ;;  %v2698_v20 = vld [vmem:[%s3609_s1 + $0x3d0] ss:$8 sps:$4 sm:$0xff]  }
  0xc0   :  { %1947 = vmatpush1.bf16.msra.mxu0 %v2617_v21  ;;  %1787 = vmatprep.subr.bf16.mxu1 %v2622_v22  ;;  %v2701_v21 = vld [vmem:[%s3609_s1 + $0x7d0] ss:$8 sps:$4 sm:$0xff]   ;;  %v2706_v22 = vld [vmem:[%s3609_s1 + $0x3e4] ss:$8 sps:$4 sm:$0xff]  }
  0xc1   :  { %1959 = vmatprep.subr.bf16.mxu0 %v2625_v23  ;;  %v2709_v23 = vld [vmem:[%s3609_s1 + $0x7e4] ss:$8 sps:$4 sm:$0xff]  }
  0xc2   :  { %1777 = vmatmul.mubr.bf16.vlgmr.msra.gmra.mrb[0].mxu1 %v2028_v27  ;;  %v2704_v27 = vld [vmem:[%s3609_s1 + $0x3e0] ss:$8 sps:$4 sm:$0xff]  }
  0xc3   :  { %1949 = vmatmul.mubr.bf16.vlgmr.msra.gmra.mrb[0].mxu0 %v2036_v28  ;;  %1788 = vmatpush1.bf16.msra.mxu1 %v2620_v24  ;;  %v2707_v28 = vld [vmem:[%s3609_s1 + $0x7e0] ss:$8 sps:$4 sm:$0xff]   ;;  %v2712_v24 = vld [vmem:[%s3609_s1 + $0x3f4] ss:$8 sps:$4 sm:$0xff]  }
  0xc4   :  { %1960 = vmatpush1.bf16.msra.mxu0 %v2623_v25  ;;  %1789 = vmatprep.subr.bf16.mxu1 %v2628_v29  ;;  %v2715_v25 = vld [vmem:[%s3609_s1 + $0x7f4] ss:$8 sps:$4 sm:$0xff]   ;;  %v2710_v29 = vld [vmem:[%s3609_s1 + $0x3f0] ss:$8 sps:$4 sm:$0xff]  }
  0xc5   :  { %1961 = vmatprep.subr.bf16.mxu0 %v2631_v30  ;;  %1819 = vmatprep.mubr.bf16.mxu1 %v2031_v34  ;;  %v2713_v30 = vld [vmem:[%s3609_s1 + $0x7f0] ss:$8 sps:$4 sm:$0xff]   ;;  %v2030_v34 = vcombine.low %v3385_v26, %v3394_v31 }
  0xc6   :  { %1991 = vmatprep.mubr.bf16.mxu0 %v2039_v35  ;;  %v2038_v35 = vcombine.low %v3399_v32, %v3404_v33 }
  0xc7   :  { %1790 = vmatpush1.bf16.msra.mxu1 %v2626_v36  ;;  %v288_v36 = vlaneseq }
  0xc8   :  { %1962 = vmatpush1.bf16.msra.mxu0 %v2629_v37  ;;  %1791 = vmatprep.subr.bf16.mxu1 %v2634_v38 }
  0xc9   :  { %1963 = vmatprep.subr.bf16.mxu0 %v2637_v39  ;;  %v289_v37 = vshrl.u32 %v288_v36, 7  ;;  %v286_v39 = vld [vmem:[%s3611_s2] sm:$0x3] }
  0xcb   :  { %1792 = vmatpush1.bf16.msra.mxu1 %v2632_v40  ;;  %v290_v38 = vsub.s32 0, %v289_v37  ;;  %v294_v40 = vsub.s32 1, %v289_v37 }
  0xcc   :  { %1964 = vmatpush1.bf16.msra.mxu0 %v2635_v41  ;;  %1793 = vmatprep.subr.bf16.mxu1 %v2640_v42 }
  0xcd   :  { %1965 = vmatprep.subr.bf16.mxu0 %v2643_v43  ;;  %v291_v41 = vrot.slane %v286_v39, %v290_v38  ;;  %v295_v42 = vrot.slane %v286_v39, %v294_v40 }
  0xcf   :  { %1794 = vmatpush1.bf16.msra.mxu1 %v2638_v44 }
  0xd0   :  { %1966 = vmatpush1.bf16.msra.mxu0 %v2641_v45  ;;  %1795 = vmatprep.subr.bf16.mxu1 %v2646_v46 }
  0xd1   :  { %1967 = vmatprep.subr.bf16.mxu0 %v2649_v47 }
  0xd3   :  { %1796 = vmatpush1.bf16.msra.mxu1 %v2644_v48 }
  0xd4   :  { %1968 = vmatpush1.bf16.msra.mxu0 %v2647_v49  ;;  %1797 = vmatprep.subr.bf16.mxu1 %v2652_v50 }
  0xd5   :  { %1969 = vmatprep.subr.bf16.mxu0 %v2655_v51 }
  0xd7   :  { %1798 = vmatpush1.bf16.msra.mxu1 %v2650_v52 }
  0xd8   :  { %1970 = vmatpush1.bf16.msra.mxu0 %v2653_v53  ;;  %1799 = vmatprep.subr.bf16.mxu1 %v2658_v54 }
  0xd9   :  { %1971 = vmatprep.subr.bf16.mxu0 %v2661_v55 }
  0xdb   :  { %1800 = vmatpush1.bf16.msra.mxu1 %v2656_v56 }
  0xdc   :  { %1972 = vmatpush1.bf16.msra.mxu0 %v2659_v57  ;;  %1801 = vmatprep.subr.bf16.mxu1 %v2664_v58 }
  0xdd   :  { %1973 = vmatprep.subr.bf16.mxu0 %v2667_v59 }
  0xdf   :  { %1802 = vmatpush1.bf16.msra.mxu1 %v2662_v60 }
  0xe0   :  { %1974 = vmatpush1.bf16.msra.mxu0 %v2665_v61  ;;  %1803 = vmatprep.subr.bf16.mxu1 %v2670_v62 }
  0xe1   :  { %1975 = vmatprep.subr.bf16.mxu0 %v2673_v63 }
  0xe3   :  { %1804 = vmatpush1.bf16.msra.mxu1 %v2668_v0 }
  0xe4   :  { %1976 = vmatpush1.bf16.msra.mxu0 %v2671_v1  ;;  %1805 = vmatprep.subr.bf16.mxu1 %v2676_v2 }
  0xe5   :  { %1977 = vmatprep.subr.bf16.mxu0 %v2679_v3 }
  0xe7   :  { %1806 = vmatpush1.bf16.msra.mxu1 %v2674_v4 }
  0xe8   :  { %1978 = vmatpush1.bf16.msra.mxu0 %v2677_v5  ;;  %1807 = vmatprep.subr.bf16.mxu1 %v2682_v6 }
  0xe9   :  { %1979 = vmatprep.subr.bf16.mxu0 %v2685_v7 }
  0xeb   :  { %1808 = vmatpush1.bf16.msra.mxu1 %v2680_v8 }
  0xec   :  { %1980 = vmatpush1.bf16.msra.mxu0 %v2683_v9  ;;  %1809 = vmatprep.subr.bf16.mxu1 %v2688_v10 }
  0xed   :  { %1981 = vmatprep.subr.bf16.mxu0 %v2691_v11 }
  0xef   :  { %1810 = vmatpush1.bf16.msra.mxu1 %v2686_v12 }
  0xf0   :  { %1982 = vmatpush1.bf16.msra.mxu0 %v2689_v13  ;;  %1811 = vmatprep.subr.bf16.mxu1 %v2694_v14 }
  0xf1   :  { %1983 = vmatprep.subr.bf16.mxu0 %v2697_v15 }
  0xf3   :  { %1812 = vmatpush1.bf16.msra.mxu1 %v2692_v16 }
  0xf4   :  { %1984 = vmatpush1.bf16.msra.mxu0 %v2695_v17  ;;  %1813 = vmatprep.subr.bf16.mxu1 %v2700_v18 }
  0xf5   :  { %1985 = vmatprep.subr.bf16.mxu0 %v2703_v19 }
  0xf7   :  { %1814 = vmatpush1.bf16.msra.mxu1 %v2698_v20 }
  0xf8   :  { %1986 = vmatpush1.bf16.msra.mxu0 %v2701_v21  ;;  %1815 = vmatprep.subr.bf16.mxu1 %v2706_v22 }
  0xf9   :  { %1987 = vmatprep.subr.bf16.mxu0 %v2709_v23 }
  0xfb   :  { %1816 = vmatpush1.bf16.msra.mxu1 %v2704_v27 }
  0xfc   :  { %1988 = vmatpush1.bf16.msra.mxu0 %v2707_v28  ;;  %1817 = vmatprep.subr.bf16.mxu1 %v2712_v24 }
  0xfd   :  { %1989 = vmatprep.subr.bf16.mxu0 %v2715_v25 }
  0xff   :  { %1818 = vmatpush1.bf16.msra.mxu1 %v2710_v29 }
 0x100   :  { %1990 = vmatpush1.bf16.msra.mxu0 %v2713_v30 }
 0x102   :  { %1820 = vmatmul.mubr.bf16.vlgmr.msra.gmra.mrb[0].mxu1 %v2030_v34 }
 0x103   :  { %1992 = vmatmul.mubr.bf16.vlgmr.msra.gmra.mrb[0].mxu0 %v2038_v35 }
 0x1d5   :  { %v1821_v43 = vpop.f32.mrb[0].mxu1 }
 0x1d6   :  { %v1993_v44 = vpop.f32.mrb[0].mxu0  ;;  %v2300_v26 = vadd.f32 %v1821_v43, %v291_v41  ;;  %v1823_v31 = vpop.f32.mrb[1].mxu1 }
 0x1d7   :  { %v1995_v45 = vpop.f32.mrb[1].mxu0  ;;  %v2302_v32 = vadd.f32 %v1823_v31, %v295_v42  ;;  %v1825_v33 = vpop.f32.mrb[2].mxu1 }
 0x1d8   :  { %v1997_v46 = vpop.f32.mrb[2].mxu0  ;;  %v2301_v47 = vadd.f32 %v2300_v26, %v1993_v44  ;;  %v2304_v48 = vadd.f32 %v1825_v33, %v291_v41  ;;  %v1827_v49 = vpop.f32.mrb[3].mxu1 }
 0x1d9   :  { %v1999_v50 = vpop.f32.mrb[3].mxu0  ;;  %v2303_v51 = vadd.f32 %v2302_v32, %v1995_v45  ;;  %v2306_v52 = vadd.f32 %v1827_v49, %v295_v42 }
 0x1da   :  { %v2002_v53 = vmax.f32 %v2301_v47, 0.0  ;;  %v2305_v54 = vadd.f32 %v2304_v48, %v1997_v46 }
 0x1db   :  { %v2003_v55 = vmax.f32 %v2303_v51, 0.0  ;;  %v2307_v56 = vadd.f32 %v2306_v52, %v1999_v50 }
 0x1dc   :  { %v2004_v57 = vmax.f32 %v2305_v54, 0.0 }
 0x1dd   :  { %v2298_v58 = vpack.c.bf16 %v2003_v55, %v2002_v53  ;;  %v2005_v59 = vmax.f32 %v2307_v56, 0.0 }
 0x1df   :  { %2018 = vst [vmem:[%s3612_s3] sm:$0xff] %v2298_v58  ;;  %v2299_v60 = vpack.c.bf16 %v2005_v59, %v2004_v57 }
 0x1e1   :  { %2019 = vst [vmem:[%s3612_s3 + $0x8] sm:$0xff] %v2299_v60 }

// kernel: segnet_forward.10
= control target key start
LH: loop header
LB: loop body
LE: loop exit
PB: predicated region body
PF: predicated region fallthrough
CT: control target
= control target key end

     0   :  { %s1013_s12 = smov 0   ;;  %s1015_s13 = smov 0   ;;  %s1091_s0 = inlined_call_operand.vmem [shape: bf16[4,32,512], index: 0, kind: input, shape index: {}]   ;;  %s1092_s1 = inlined_call_operand.vmem [shape: bf16[4,512,128], index: 1, kind: input, shape index: {}]   ;;  %s1093_s2 = inlined_call_operand.vmem [shape: f32[1,128], index: 2, kind: input, shape index: {}]   ;;  %s1094_s3 = inlined_call_operand.vmem [shape: bf16[4,32,128], index: 3, kind: output, shape index: {}]  }
   0x1   :  { %s1017_s14 = smov 0  }
   0x2 LB: > { %s25_s15 = sadd.s32 1, %s987_s13  ;;  %p773_p0 = scmp.ge.s32.totalorder %s991_s14, 1  ;;  %s991_s14 = sphi %s1017_s14, %s13_s14   ;;  %s987_s13 = sphi %s1015_s13, %s1096_s13   ;;  %s983_s12 = sphi %s1013_s12, %s1095_s12  }
   0x3   : > { %p27_p1 = scmp.ge.s32.totalorder %s25_s15, 4  ;;  %p169_p2 = scmp.lt.s32.totalorder %s991_s14, 5 }
   0x5   : > { %s1098_s15 = smov (%p27_p1, %s25_s15), 0  ;;  %p170_p3 = pnand %p773_p0, %p169_p2 }
   0x6   : > { %p208_p4 = scmp.lt.s32.totalorder (!%p170_p3), %s983_s12, 3  ;;  %v780_v42 = vld [vmem:[%s1093_s2] ss:$0 sm:$0xff] (!%p170_p3) }
   0x7   : > { %173 = sbr.rel (%p170_p3) target bundleno = 285 (0x11d), region = 32 }
   0xe   : > { %s1100_s12 = smov (!%p208_p4, %s983_s12), 3 }
   0xf   : > { %s828_s16 = sshll.u32 %s1100_s12, 8  ;;  %s827_s20 = sshll.u32 %s1100_s12, 6 }
  0x10   : > { %s1037_s19 = scalar_lea.vmem %s1092_s1, %s828_s16  ;;  %s216_s23 = scalar_lea.vmem %s1091_s0, %s827_s20 }
  0x11   : > { %v925_v0 = vld [vmem:[%s1037_s19 + $0x40] sm:$0xff]   ;;  %v929_v4 = vld [vmem:[%s1037_s19 + $0x48] sm:$0xff]   ;;  %v933_v8 = vld [vmem:[%s1037_s19 + $0x50] sm:$0xff]   ;;  %s829_s26 = sshll.u32 %s1100_s12, 4 }
  0x12   : > { %v926_v1 = vld [vmem:[%s1037_s19 + $0xc0] sm:$0xff]   ;;  %845 = vmatprep.subr.bf16.mxu0 %v925_v0  ;;  %v930_v5 = vld [vmem:[%s1037_s19 + $0xc8] sm:$0xff]   ;;  %v934_v9 = vld [vmem:[%s1037_s19 + $0xd0] sm:$0xff]   ;;  %s231_s29 = scalar_lea.vmem %s1094_s3, %s829_s26 }
  0x13   : > { %v927_v2 = vld [vmem:[%s1037_s19] sm:$0xff]   ;;  %873 = vmatprep.subr.bf16.mxu1 %v926_v1  ;;  %v931_v6 = vld [vmem:[%s1037_s19 + $0x8] sm:$0xff]   ;;  %v935_v10 = vld [vmem:[%s1037_s19 + $0x10] sm:$0xff]  }
  0x14   : > { %v928_v3 = vld [vmem:[%s1037_s19 + $0x80] sm:$0xff]   ;;  %846 = vmatpush3.bf16.msra.mxu0 %v927_v2  ;;  %v932_v7 = vld [vmem:[%s1037_s19 + $0x88] sm:$0xff]   ;;  %v936_v11 = vld [vmem:[%s1037_s19 + $0x90] sm:$0xff]  }
  0x15   : > { %874 = vmatpush3.bf16.msra.mxu1 %v928_v3  ;;  %847 = vmatprep.subr.bf16.mxu0 %v929_v4  ;;  %v937_v12 = vld [vmem:[%s1037_s19 + $0x58] sm:$0xff]   ;;  %v941_v16 = vld [vmem:[%s1037_s19 + $0x60] sm:$0xff]   ;;  %v945_v20 = vld [vmem:[%s1037_s19 + $0x68] sm:$0xff]  }
  0x16   : > { %875 = vmatprep.subr.bf16.mxu1 %v930_v5  ;;  %v938_v13 = vld [vmem:[%s1037_s19 + $0xd8] sm:$0xff]   ;;  %v942_v17 = vld [vmem:[%s1037_s19 + $0xe0] sm:$0xff]   ;;  %v946_v21 = vld [vmem:[%s1037_s19 + $0xe8] sm:$0xff]  }
  0x17   : > { %v939_v14 = vld [vmem:[%s1037_s19 + $0x18] sm:$0xff]   ;;  %v943_v18 = vld [vmem:[%s1037_s19 + $0x20] sm:$0xff]   ;;  %v947_v22 = vld [vmem:[%s1037_s19 + $0x28] sm:$0xff]  }
  0x18   : > { %848 = vmatpush3.bf16.msra.mxu0 %v931_v6  ;;  %v940_v15 = vld [vmem:[%s1037_s19 + $0x98] sm:$0xff]   ;;  %v944_v19 = vld [vmem:[%s1037_s19 + $0xa0] sm:$0xff]   ;;  %v948_v23 = vld [vmem:[%s1037_s19 + $0xa8] sm:$0xff]  }
  0x19   : > { %876 = vmatpush3.bf16.msra.mxu1 %v932_v7  ;;  %849 = vmatprep.subr.bf16.mxu0 %v933_v8  ;;  %v949_v24 = vld [vmem:[%s1037_s19 + $0x70] sm:$0xff]   ;;  %v953_v28 = vld [vmem:[%s1037_s19 + $0x78] sm:$0xff]  }
  0x1a   : > { %877 = vmatprep.subr.bf16.mxu1 %v934_v9  ;;  %v950_v25 = vld [vmem:[%s1037_s19 + $0xf0] sm:$0xff]   ;;  %v954_v29 = vld [vmem:[%s1037_s19 + $0xf8] sm:$0xff]  }
  0x1b   : > { %v951_v26 = vld [vmem:[%s1037_s19 + $0x30] sm:$0xff]   ;;  %v955_v30 = vld [vmem:[%s1037_s19 + $0x38] sm:$0xff]  }
  0x1c   : > { %850 = vmatpush3.bf16.msra.mxu0 %v935_v10  ;;  %v952_v27 = vld [vmem:[%s1037_s19 + $0xb0] sm:$0xff]   ;;  %v956_v31 = vld [vmem:[%s1037_s19 + $0xb8] sm:$0xff]  }
  0x1d   : > { %878 = vmatpush3.bf16.msra.mxu1 %v936_v11  ;;  %851 = vmatprep.subr.bf16.mxu0 %v937_v12  ;;  %v957_v32 = vld [vmem:[%s216_s23] ss:$16 sps:$4 sm:$0xff]   ;;  %v959_v33 = vld [vmem:[%s216_s23 + $0x4] ss:$16 sps:$4 sm:$0xff]   ;;  %v960_v34 = vld [vmem:[%s216_s23 + $0x8] ss:$16 sps:$4 sm:$0xff]  }
  0x1e   : > { %879 = vmatprep.subr.bf16.mxu1 %v938_v13  ;;  %v962_v35 = vld [vmem:[%s216_s23 + $0xc] ss:$16 sps:$4 sm:$0xff]   ;;  %577 = vmatprep.mubr.bf16.mxu0 %v959_v33  ;;  %v963_v36 = vld [vmem:[%s216_s23 + $0x24] ss:$16 sps:$4 sm:$0xff]   ;;  %v967_v38 = vld [vmem:[%s216_s23 + $0x20] ss:$16 sps:$4 sm:$0xff]  }
  0x1f   : > { %626 = vmatprep.mubr.bf16.mxu1 %v962_v35  ;;  %v965_v37 = vld [vmem:[%s216_s23 + $0x2c] ss:$16 sps:$4 sm:$0xff]   ;;  %v968_v39 = vld [vmem:[%s216_s23 + $0x28] ss:$16 sps:$4 sm:$0xff]  }
  0x20   : > { %852 = vmatpush3.bf16.msra.mxu0 %v939_v14 }
  0x21   : > { %880 = vmatpush3.bf16.msra.mxu1 %v940_v15  ;;  %853 = vmatprep.subr.bf16.mxu0 %v941_v16 }
  0x22   : > { %881 = vmatprep.subr.bf16.mxu1 %v942_v17 }
  0x24   : > { %854 = vmatpush3.bf16.msra.mxu0 %v943_v18 }
  0x25   : > { %882 = vmatpush3.bf16.msra.mxu1 %v944_v19  ;;  %855 = vmatprep.subr.bf16.mxu0 %v945_v20 }
  0x26   : > { %883 = vmatprep.subr.bf16.mxu1 %v946_v21 }
  0x28   : > { %856 = vmatpush3.bf16.msra.mxu0 %v947_v22 }
  0x29   : > { %884 = vmatpush3.bf16.msra.mxu1 %v948_v23  ;;  %857 = vmatprep.subr.bf16.mxu0 %v949_v24 }
  0x2a   : > { %885 = vmatprep.subr.bf16.mxu1 %v950_v25 }
  0x2c   : > { %858 = vmatpush3.bf16.msra.mxu0 %v951_v26 }
  0x2d   : > { %886 = vmatpush3.bf16.msra.mxu1 %v952_v27  ;;  %859 = vmatprep.subr.bf16.mxu0 %v953_v28 }
  0x2e   : > { %887 = vmatprep.subr.bf16.mxu1 %v954_v29 }
  0x30   : > { %860 = vmatpush3.bf16.msra.mxu0 %v955_v30 }
  0x31   : > { %888 = vmatpush3.bf16.msra.mxu1 %v956_v31 }
  0x33   : > { %578 = vmatmul.mubr.bf16.vlgmr.msra.gmra.mrb[0].mxu0 %v957_v32 }
  0x34   : > { %627 = vmatmul.mubr.bf16.vlgmr.msra.gmra.mrb[0].mxu1 %v960_v34  ;;  %585 = vmatprep.mubr.bf16.mxu0 %v963_v36 }
  0x35   : > { %634 = vmatprep.mubr.bf16.mxu1 %v965_v37 }
  0x3b   : > { %586 = vmatmul.mubr.bf16.gmra.mrb[4].mxu0 %v967_v38 }
  0x3c   : > { %635 = vmatmul.mubr.bf16.gmra.mrb[4].mxu1 %v968_v39 }
 0x106   : > { %v861_v40 = vpop.f32.mrb[0].mxu0 }
 0x107   : > { %v889_v41 = vpop.f32.mrb[0].mxu1  ;;  %v862_v43 = vpop.f32.mrb[1].mxu0 }
 0x108   : > { %v863_v44 = vadd.f32 %v862_v43, %v861_v40  ;;  %v890_v45 = vpop.f32.mrb[1].mxu1  ;;  %v864_v46 = vpop.f32.mrb[2].mxu0 }
 0x109   : > { %v891_v47 = vadd.f32 %v890_v45, %v889_v41  ;;  %v892_v48 = vpop.f32.mrb[2].mxu1  ;;  %v865_v49 = vpop.f32.mrb[3].mxu0 }
 0x10a   : > { %v580_v50 = vadd.f32 %v863_v44, %v780_v42  ;;  %v866_v51 = vadd.f32 %v865_v49, %v864_v46  ;;  %v893_v52 = vpop.f32.mrb[3].mxu1 }
 0x10b   : > { %v894_v53 = vadd.f32 %v893_v52, %v892_v48 }
 0x10c   : > { %v629_v54 = vadd.f32 %v891_v47, %v580_v50  ;;  %v583_v55 = vadd.f32 %v866_v51, %v780_v42 }
 0x10e   : > { %v632_v56 = vadd.f32 %v894_v53, %v583_v55  ;;  %v867_v57 = vpop.f32.mrb[4].mxu0  ;;  %v643_v60 = vmax.f32 %v629_v54, 0.0 }
 0x10f   : > { %v895_v58 = vpop.f32.mrb[4].mxu1  ;;  %v868_v59 = vpop.f32.mrb[5].mxu0 }
 0x110   : > { %v644_v61 = vmax.f32 %v632_v56, 0.0  ;;  %v869_v62 = vadd.f32 %v868_v59, %v867_v57  ;;  %v896_v63 = vpop.f32.mrb[5].mxu1  ;;  %v870_v0 = vpop.f32.mrb[6].mxu0 }
 0x111   : > { %v897_v1 = vadd.f32 %v896_v63, %v895_v58  ;;  %v898_v2 = vpop.f32.mrb[6].mxu1  ;;  %v871_v3 = vpop.f32.mrb[7].mxu0 }
 0x112   : > { %v837_v4 = vpack.c.bf16 %v644_v61, %v643_v60  ;;  %v588_v5 = vadd.f32 %v869_v62, %v780_v42  ;;  %v872_v6 = vadd.f32 %v871_v3, %v870_v0  ;;  %v899_v7 = vpop.f32.mrb[7].mxu1 }
 0x113   : > { %v900_v8 = vadd.f32 %v899_v7, %v898_v2 }
 0x114   : > { %838 = vst [vmem:[%s231_s29] sm:$0xff] %v837_v4   ;;  %v637_v9 = vadd.f32 %v897_v1, %v588_v5  ;;  %v591_v10 = vadd.f32 %v872_v6, %v780_v42 }
 0x116   : > { %v640_v11 = vadd.f32 %v900_v8, %v591_v10  ;;  %v645_v12 = vmax.f32 %v637_v9, 0.0 }
 0x118   : > { %v646_v13 = vmax.f32 %v640_v11, 0.0 }
 0x11a   : > { %v842_v14 = vpack.c.bf16 %v646_v13, %v645_v12 }
 0x11c   : > { %844 = vst [vmem:[%s231_s29 + $0x8] sm:$0xff] %v842_v14  }
 0x11d PF: > { %s13_s14 = sadd.s32 1, %s991_s14   ;;  %s1095_s12 = smov %s987_s13 }
 0x11e   : > { %p10_p5 = scmp.ge.s32.totalorder %s13_s14, 6   ;;  %s1096_s13 = smov %s1098_s15 }
 0x120   :  { %12 = sbr.rel (!%p10_p5) target bundleno = 2 (0x2), region = 65 }

// kernel: segnet_forward.11
= control target key start
LH: loop header
LB: loop body
LE: loop exit
PB: predicated region body
PF: predicated region fallthrough
CT: control target
= control target key end

     0   :  { %s892_s12 = smov 0   ;;  %s894_s13 = smov 0   ;;  %s986_s0 = inlined_call_operand.vmem [shape: bf16[4,128,256], index: 0, kind: input, shape index: {}]   ;;  %s987_s1 = inlined_call_operand.vmem [shape: bf16[4,256,128], index: 1, kind: input, shape index: {}]   ;;  %s988_s2 = inlined_call_operand.vmem [shape: f32[1,128], index: 2, kind: input, shape index: {}]   ;;  %s989_s3 = inlined_call_operand.vmem [shape: bf16[4,128,128], index: 3, kind: output, shape index: {}]  }
   0x1   :  { %s896_s14 = smov 0   ;;  %s898_s15 = smov 0  }
   0x2   :  { %s900_s16 = smov 0  }
   0x3 LB: > { %s22_s17 = sadd.s32 1, %s862_s14  ;;  %s25_s18 = sadd.s32 1, %s866_s15  ;;  %s870_s16 = sphi %s900_s16, %s13_s16   ;;  %s866_s15 = sphi %s898_s15, %s993_s15   ;;  %s862_s14 = sphi %s896_s14, %s992_s14   ;;  %s858_s13 = sphi %s894_s13, %s991_s13   ;;  %s854_s12 = sphi %s892_s12, %s990_s12  }
   0x4   : > { %p23_p0 = scmp.ge.s32.totalorder %s22_s17, 2  ;;  %p631_p1 = scmp.ge.s32.totalorder %s870_s16, 1 }
   0x5   : > { %p169_p2 = scmp.lt.s32.totalorder %s870_s16, 9 }
   0x6   : > { %s995_s17 = smov (%p23_p0, %s22_s17), 0  ;;  %s997_s18 = smov (!%p23_p0, %s25_s18), %s866_s15 }
   0x7   : > { %p170_p3 = pnand %p631_p1, %p169_p2  ;;  %p27_p4 = scmp.ge.s32.totalorder %s997_s18, 4 }
   0x8   : > { %p208_p5 = scmp.lt.s32.totalorder (!%p170_p3), %s858_s13, 3  ;;  %s632_s19 = sshll.u32 (!%p170_p3), %s854_s12, 3  ;;  %v641_v32 = vld [vmem:[%s988_s2] ss:$0 sm:$0xff] (!%p170_p3) }
   0x9   : > { %s999_s18 = smov (%p27_p4, %s997_s18), 0  ;;  %173 = sbr.rel (%p170_p3) target bundleno = 282 (0x11a), region = 32 }
   0xa   : > { %p210_p6 = scmp.lt.s32.totalorder (!%p170_p3), %s632_s19, 15 }
  0x10   : > { %s1001_s13 = smov (!%p208_p5, %s858_s13), 3  ;;  %s1003_s19 = smov (!%p210_p6, %s632_s19), 15 }
  0x11   : > { %s676_s20 = sshll.u32 %s1001_s13, 7  ;;  %s633_s24 = sshll.u32 %s1003_s19, 1 }
  0x12   : > { %s928_s23 = scalar_lea.vmem %s987_s1, %s676_s20  ;;  %s634_s25 = sshll.u32 %s1001_s13, 5 }
  0x13   : > { %v804_v0 = vld [vmem:[%s928_s23 + $0x40] sm:$0xff]   ;;  %v806_v2 = vld [vmem:[%s928_s23 + $0x48] sm:$0xff]   ;;  %v808_v4 = vld [vmem:[%s928_s23 + $0x50] sm:$0xff]   ;;  %s214_s26 = sadd.s32 %s634_s25, %s633_s24  ;;  %s639_s4 = sshll.u32 %s1001_s13, 4 }
  0x14   : > { %v805_v1 = vld [vmem:[%s928_s23] sm:$0xff]   ;;  %708 = vmatprep.subr.bf16.mxu0 %v804_v0  ;;  %748 = vmatprep.subr.bf16.mxu1 %v804_v0  ;;  %v807_v3 = vld [vmem:[%s928_s23 + $0x8] sm:$0xff]   ;;  %v809_v5 = vld [vmem:[%s928_s23 + $0x10] sm:$0xff]   ;;  %s635_s27 = sshll.u32 %s214_s26, 2  ;;  %s229_s5 = sadd.s32 %s639_s4, %s1003_s19 }
  0x15   : > { %709 = vmatpush3.bf16.msra.mxu0 %v805_v1  ;;  %756 = vmatpush3.bf16.msra.mxu1 %v805_v1  ;;  %v810_v6 = vld [vmem:[%s928_s23 + $0x58] sm:$0xff]   ;;  %v812_v8 = vld [vmem:[%s928_s23 + $0x60] sm:$0xff]   ;;  %s946_s30 = scalar_lea.vmem %s986_s0, %s635_s27  ;;  %v814_v10 = vld [vmem:[%s928_s23 + $0x68] sm:$0xff]   ;;  %s640_s8 = sshll.u32 %s229_s5, 2 }
  0x16   : > { %710 = vmatprep.subr.bf16.mxu0 %v806_v2  ;;  %749 = vmatprep.subr.bf16.mxu1 %v806_v2  ;;  %v811_v7 = vld [vmem:[%s928_s23 + $0x18] sm:$0xff]   ;;  %v813_v9 = vld [vmem:[%s928_s23 + $0x20] sm:$0xff]   ;;  %v815_v13 = vld [vmem:[%s928_s23 + $0x28] sm:$0xff]   ;;  %s231_s11 = scalar_lea.vmem %s989_s3, %s640_s8 }
  0x17   : > { %v822_v11 = vld [vmem:[%s946_s30 + $0x4] ss:$8 sps:$4 sm:$0xff]   ;;  %v816_v14 = vld [vmem:[%s928_s23 + $0x70] sm:$0xff]   ;;  %v818_v16 = vld [vmem:[%s928_s23 + $0x78] sm:$0xff]  }
  0x18   : > { %v825_v12 = vld [vmem:[%s946_s30 + $0x24] ss:$8 sps:$4 sm:$0xff]   ;;  %449 = vmatprep.mubr.bf16.mxu0 %v822_v11  ;;  %v817_v15 = vld [vmem:[%s928_s23 + $0x30] sm:$0xff]   ;;  %v819_v17 = vld [vmem:[%s928_s23 + $0x38] sm:$0xff]  }
  0x19   : > { %711 = vmatpush3.bf16.msra.mxu0 %v807_v3  ;;  %757 = vmatpush3.bf16.msra.mxu1 %v807_v3  ;;  %v820_v18 = vld [vmem:[%s946_s30] ss:$8 sps:$4 sm:$0xff]   ;;  %v826_v20 = vld [vmem:[%s946_s30 + $0x14] ss:$8 sps:$4 sm:$0xff]   ;;  %v830_v22 = vld [vmem:[%s946_s30 + $0x10] ss:$8 sps:$4 sm:$0xff]  }
  0x1a   : > { %712 = vmatprep.subr.bf16.mxu0 %v808_v4  ;;  %750 = vmatprep.subr.bf16.mxu1 %v808_v4  ;;  %v823_v19 = vld [vmem:[%s946_s30 + $0x20] ss:$8 sps:$4 sm:$0xff]   ;;  %v828_v21 = vld [vmem:[%s946_s30 + $0x34] ss:$8 sps:$4 sm:$0xff]   ;;  %v831_v23 = vld [vmem:[%s946_s30 + $0x30] ss:$8 sps:$4 sm:$0xff]  }
  0x1b   : > { %465 = vmatprep.mubr.bf16.mxu1 %v825_v12 }
  0x1d   : > { %713 = vmatpush3.bf16.msra.mxu0 %v809_v5  ;;  %758 = vmatpush3.bf16.msra.mxu1 %v809_v5 }
  0x1e   : > { %714 = vmatprep.subr.bf16.mxu0 %v810_v6  ;;  %751 = vmatprep.subr.bf16.mxu1 %v810_v6 }
  0x21   : > { %715 = vmatpush3.bf16.msra.mxu0 %v811_v7  ;;  %759 = vmatpush3.bf16.msra.mxu1 %v811_v7 }
  0x22   : > { %716 = vmatprep.subr.bf16.mxu0 %v812_v8  ;;  %752 = vmatprep.subr.bf16.mxu1 %v812_v8 }
  0x25   : > { %717 = vmatpush3.bf16.msra.mxu0 %v813_v9  ;;  %760 = vmatpush3.bf16.msra.mxu1 %v813_v9 }
  0x26   : > { %718 = vmatprep.subr.bf16.mxu0 %v814_v10  ;;  %753 = vmatprep.subr.bf16.mxu1 %v814_v10 }
  0x29   : > { %719 = vmatpush3.bf16.msra.mxu0 %v815_v13  ;;  %761 = vmatpush3.bf16.msra.mxu1 %v815_v13 }
  0x2a   : > { %720 = vmatprep.subr.bf16.mxu0 %v816_v14  ;;  %754 = vmatprep.subr.bf16.mxu1 %v816_v14 }
  0x2d   : > { %721 = vmatpush3.bf16.msra.mxu0 %v817_v15  ;;  %762 = vmatpush3.bf16.msra.mxu1 %v817_v15 }
  0x2e   : > { %722 = vmatprep.subr.bf16.mxu0 %v818_v16  ;;  %755 = vmatprep.subr.bf16.mxu1 %v818_v16 }
  0x31   : > { %723 = vmatpush3.bf16.msra.mxu0 %v819_v17  ;;  %763 = vmatpush3.bf16.msra.mxu1 %v819_v17 }
  0x34   : > { %450 = vmatmul.mubr.bf16.vlgmr.msra.gmra.mrb[0].mxu0 %v820_v18  ;;  %466 = vmatmul.mubr.bf16.vlgmr.msra.gmra.mrb[0].mxu1 %v823_v19 }
  0x35   : > { %457 = vmatprep.mubr.bf16.mxu0 %v826_v20  ;;  %473 = vmatprep.mubr.bf16.mxu1 %v828_v21 }
  0x3c   : > { %458 = vmatmul.mubr.bf16.gmra.mrb[4].mxu0 %v830_v22  ;;  %474 = vmatmul.mubr.bf16.gmra.mrb[4].mxu1 %v831_v23 }
 0x107   : > { %v724_v24 = vpop.f32.mrb[0].mxu0  ;;  %v736_v25 = vpop.f32.mrb[0].mxu1 }
 0x108   : > { %v725_v26 = vpop.f32.mrb[1].mxu0  ;;  %v737_v27 = vpop.f32.mrb[1].mxu1 }
 0x109   : > { %v726_v28 = vadd.f32 %v725_v26, %v724_v24  ;;  %v738_v29 = vadd.f32 %v737_v27, %v736_v25  ;;  %v727_v30 = vpop.f32.mrb[2].mxu0  ;;  %v739_v31 = vpop.f32.mrb[2].mxu1 }
 0x10a   : > { %v728_v33 = vpop.f32.mrb[3].mxu0  ;;  %v740_v34 = vpop.f32.mrb[3].mxu1 }
 0x10b   : > { %v729_v35 = vadd.f32 %v728_v33, %v727_v30  ;;  %v741_v36 = vadd.f32 %v740_v34, %v739_v31  ;;  %v452_v37 = vadd.f32 %v726_v28, %v641_v32  ;;  %v468_v38 = vadd.f32 %v738_v29, %v641_v32 }
 0x10d   : > { %v455_v39 = vadd.f32 %v729_v35, %v641_v32  ;;  %v471_v40 = vadd.f32 %v741_v36, %v641_v32 }
 0x10f   : > { %v688_v41 = vpack.c.bf16 %v455_v39, %v452_v37  ;;  %v698_v42 = vpack.c.bf16 %v471_v40, %v468_v38  ;;  %v730_v43 = vpop.f32.mrb[4].mxu0  ;;  %v742_v44 = vpop.f32.mrb[4].mxu1 }
 0x110   : > { %v731_v45 = vpop.f32.mrb[5].mxu0  ;;  %v743_v46 = vpop.f32.mrb[5].mxu1 }
 0x111   : > { %689 = vst [vmem:[%s231_s11] sm:$0xff] %v688_v41   ;;  %706 = vst [vmem:[%s231_s11 + $0x10] sm:$0xff] %v698_v42   ;;  %v732_v47 = vadd.f32 %v731_v45, %v730_v43  ;;  %v744_v48 = vadd.f32 %v743_v46, %v742_v44  ;;  %v733_v49 = vpop.f32.mrb[6].mxu0  ;;  %v745_v50 = vpop.f32.mrb[6].mxu1 }
 0x112   : > { %v734_v51 = vpop.f32.mrb[7].mxu0  ;;  %v746_v52 = vpop.f32.mrb[7].mxu1 }
 0x113   : > { %v735_v53 = vadd.f32 %v734_v51, %v733_v49  ;;  %v747_v54 = vadd.f32 %v746_v52, %v745_v50  ;;  %v460_v55 = vadd.f32 %v732_v47, %v641_v32  ;;  %v476_v56 = vadd.f32 %v744_v48, %v641_v32 }
 0x115   : > { %v463_v57 = vadd.f32 %v735_v53, %v641_v32  ;;  %v479_v58 = vadd.f32 %v747_v54, %v641_v32 }
 0x117   : > { %v693_v59 = vpack.c.bf16 %v463_v57, %v460_v55  ;;  %v703_v60 = vpack.c.bf16 %v479_v58, %v476_v56 }
 0x119   : > { %705 = vst [vmem:[%s231_s11 + $0x8] sm:$0xff] %v693_v59   ;;  %707 = vst [vmem:[%s231_s11 + $0x18] sm:$0xff] %v703_v60  }
 0x11a PF: > { %s13_s16 = sadd.s32 1, %s870_s16   ;;  %s990_s12 = smov %s862_s14 }
 0x11b   : > { %p10_p7 = scmp.ge.s32.totalorder %s13_s16, 10   ;;  %s991_s13 = smov %s866_s15 }
 0x11c   : > { %s992_s14 = smov %s995_s17  ;;  %s993_s15 = smov %s999_s18 }
 0x11d   :  { %12 = sbr.rel (!%p10_p7) target bundleno = 3 (0x3), region = 65 }

</bundles_post_ra>
